<compile_context>
chip_gen: v7x
topology: tpu7x:2x2x1
jax: 0.10.0
libtpu: 0.0.40
codegen_flags: <defaults>
</compile_context>

<pallas_src>
import functools
import numpy as np
import jax
import jax.numpy as jnp
from jax.experimental import pallas as pl
from jax.experimental.pallas import tpu as pltpu


# ----------------------------------------------------------------------------
# Symmetric-extension index helpers (identical to dtcwt / pytorch_wavelets).
# ----------------------------------------------------------------------------
def _reflect(x, minx, maxx):
    x = np.asarray(x, np.float64)
    rng = maxx - minx
    rng2 = 2 * rng
    mod = np.fmod(x - minx, rng2)
    normed = np.where(mod < 0, mod + rng2, mod)
    out = np.where(normed >= rng, rng2 - normed, normed) + minx
    return out.astype(np.int64)


def _symm_pad_idx(l, m):
    return _reflect(np.arange(-m, l + m, dtype=np.float64), -0.5, l - 0.5)


# ----------------------------------------------------------------------------
# Banded synthesis matrices:  M @ X  ==  colfilter / colifilt along rows, with
# symmetric extension, taps, upsample-by-2 and 4-phase interleave folded in.
# Built once per (level-kind, size) in float64 numpy at trace time.
# ----------------------------------------------------------------------------
def _colfilter_matrix(h, n):
    h = np.asarray(h, np.float64)
    L = len(h)
    m = L // 2
    xe = _symm_pad_idx(n, m)
    hf = h[::-1]                       # flip -> correlate == true convolution
    n_out = (n + 2 * m) - L + 1
    M = np.zeros((n_out, n), np.float64)
    for i in range(n_out):
        for k in range(L):
            M[i, xe[i + k]] += hf[k]
    return M


def _colifilt_matrix(ha, hb, highpass, n):
    assert n % 2 == 0, 'colifilt input length must be even'
    ha = np.asarray(ha, np.float64)
    hb = np.asarray(hb, np.float64)
    m = len(ha)
    m2 = m // 2
    hao, hae = ha[1::2], ha[0::2]
    hbo, hbe = hb[1::2], hb[0::2]
    xe = _symm_pad_idx(n, m2)
    if m2 % 2 == 1:                    # qshift_a / qshift_06 / qshift_b
        t = np.arange(2, n + m - 1, 2)
        ta, tb = ((t - 1, t) if highpass else (t, t - 1))
        phases = [(tb, hao), (ta, hbo), (tb, hae), (ta, hbe)]
    else:                              # e.g. qshift_c (even half-length)
        t = np.arange(3, n + m, 2)
        ta, tb = ((t - 1, t) if highpass else (t, t - 1))
        phases = [(tb - 2, hae), (ta - 2, hbe), (tb, hao), (ta, hbo)]
    M = np.zeros((2 * n, n), np.float64)
    for p, (idx, hk) in enumerate(phases):
        hkf = np.asarray(hk, np.float64)[::-1]
        Lk = len(hkf)
        n_rows = len(idx) - Lk + 1     # == n // 2
        for i in range(n_rows):
            for k in range(Lk):
                M[4 * i + p, xe[idx[i + k]]] += hkf[k]
    return M


def _rj_matrix(Mr, sc):
    """Row-side matrix for the 'difference' quad terms: folds the real/imag
    de-interleave, the odd/even quad placement and the c2q signs."""
    n_out, cc = Mr.shape
    RJ = np.zeros((cc, n_out), np.float64)
    RJ[0::2, :] = -sc * Mr[:, 1::2].T
    RJ[1::2, :] = sc * Mr[:, 0::2].T
    return RJ


# ----------------------------------------------------------------------------
# Pallas kernel: one full synthesis level for TILE_N images, all in VMEM/MXU.
#   lowpass term:    Mc0 @ ll @ Mr0^T
#   subband terms:   Mc_e @ (S @ RS) + Mc_o @ (D @ RJ)
# where S/D are sums/differences of the raw interleaved orientation slabs.
# ----------------------------------------------------------------------------
_SUBBANDS = ((0, 5, 1, 0),   # lh: orientations (0,5), col filter g1, row g0
             (2, 3, 0, 1),   # hl: orientations (2,3), col filter g0, row g1
             (1, 4, 1, 1))   # hh: orientations (1,4), col filter g1, row g1


def _level_kernel(tile_n, has_low, has_high, *refs):
    i = 0
    if has_low:
        ll_ref, mc0_ref, r0_ref = refs[i:i + 3]
        i += 3
    if has_high:
        hi_ref, cme_ref, rms_ref = refs[i:i + 3]
        i += 3
    out_ref = refs[i]

    for t in range(tile_n):
        acc = None
        if has_low:
            tmp = jnp.dot(mc0_ref[...], ll_ref[t].astype(jnp.float32),
                          preferred_element_type=jnp.float32)
            acc = jnp.dot(tmp, r0_ref[...], preferred_element_type=jnp.float32)
        if has_high:
            for a, b, gc, gr in _SUBBANDS:
                wa = hi_ref[t, a].astype(jnp.float32)   # (H1, 2*W1) re/im lanes
                wb = hi_ref[t, b].astype(jnp.float32)
                ssum = wa + wb
                sdif = wa - wb
                rp = jnp.dot(ssum, rms_ref[gr],
                             preferred_element_type=jnp.float32)
                rq = jnp.dot(sdif, rms_ref[2 + gr],
                             preferred_element_type=jnp.float32)
                term = (jnp.dot(cme_ref[2 * gc], rp,
                                preferred_element_type=jnp.float32)
                        + jnp.dot(cme_ref[2 * gc + 1], rq,
                                  preferred_element_type=jnp.float32))
                acc = term if acc is None else acc + term
        out_ref[t] = acc.astype(out_ref.dtype)


def _pick_tile_n(n_imgs, per_image_floats):
    budget_floats = (4 * 1024 * 1024) // 4          # ~4 MiB of f32 per block set
    cap = int(max(1, min(n_imgs, 8, budget_floats // max(per_image_floats, 1))))
    tile = 1
    for d in range(1, cap + 1):
        if n_imgs % d == 0:
            tile = d
    if n_imgs >= 2 and tile == n_imgs:              # keep >=2 grid steps (megacore)
        for d in range(tile - 1, 0, -1):
            if n_imgs % d == 0:
                tile = d
                break
    return tile


def _run_level(ll, hi, mats, out_hw):
    has_low = ll is not None
    has_high = hi is not None
    n_imgs = (ll if has_low else hi).shape[0]
    ho, wo = out_hw

    per_img = ho * wo
    if has_low:
        per_img += ll.shape[1] * ll.shape[2]
    if has_high:
        per_img += 6 * hi.shape[2] * hi.shape[3]
    tile_n = _pick_tile_n(n_imgs, per_img)

    inputs, in_specs = [], []
    if has_low:
        r, c = ll.shape[1], ll.shape[2]
        inputs += [ll, mats['Mc0'], mats['R0']]
        in_specs += [
            pl.BlockSpec((tile_n, r, c), lambda i: (i, 0, 0)),
            pl.BlockSpec(mats['Mc0'].shape, lambda i: (0, 0)),
            pl.BlockSpec(mats['R0'].shape, lambda i: (0, 0)),
        ]
    if has_high:
        h1, c2 = hi.shape[2], hi.shape[3]
        inputs += [hi, mats['CME'], mats['RMS']]
        in_specs += [
            pl.BlockSpec((tile_n, 6, h1, c2), lambda i: (i, 0, 0, 0)),
            pl.BlockSpec(mats['CME'].shape, lambda i: (0, 0, 0)),
            pl.BlockSpec(mats['RMS'].shape, lambda i: (0, 0, 0)),
        ]

    kernel = functools.partial(_level_kernel, tile_n, has_low, has_high)
    return pl.pallas_call(
        kernel,
        out_shape=jax.ShapeDtypeStruct((n_imgs, ho, wo), jnp.float32),
        grid=(n_imgs // tile_n,),
        in_specs=in_specs,
        out_specs=pl.BlockSpec((tile_n, ho, wo), lambda i: (i, 0, 0)),
        compiler_params=pltpu.CompilerParams(
            dimension_semantics=("parallel",),
            vmem_limit_bytes=32 * 1024 * 1024),
    )(*inputs)


# ----------------------------------------------------------------------------
# The module.
# ----------------------------------------------------------------------------
class DTCWTInverse:
    """JAX/Pallas port of pytorch_wavelets.DTCWTInverse
    (o_dim=2, ri_dim=-1, mode='symmetric')."""

    def __init__(self, g0o, g1o, g0a, g0b, g1a, g1b, o_dim=2, ri_dim=-1,
                 mode='symmetric'):
        assert o_dim == 2 and ri_dim in (-1, 5) and mode == 'symmetric'
        self.g0o = np.asarray(g0o, np.float64)
        self.g1o = np.asarray(g1o, np.float64)
        self.g0a = np.asarray(g0a, np.float64)
        self.g0b = np.asarray(g0b, np.float64)
        self.g1a = np.asarray(g1a, np.float64)
        self.g1b = np.asarray(g1b, np.float64)
        self._mat_cache = {}

    def _level_mats(self, first_level, r, c):
        key = (bool(first_level), int(r), int(c))
        if key in self._mat_cache:
            return self._mat_cache[key]
        if first_level:
            Mc0 = _colfilter_matrix(self.g0o, r)
            Mc1 = _colfilter_matrix(self.g1o, r)
            Mr0 = _colfilter_matrix(self.g0o, c)
            Mr1 = _colfilter_matrix(self.g1o, c)
        else:
            Mc0 = _colifilt_matrix(self.g0b, self.g0a, False, r)
            Mc1 = _colifilt_matrix(self.g1b, self.g1a, True, r)
            Mr0 = _colifilt_matrix(self.g0b, self.g0a, False, c)
            Mr1 = _colifilt_matrix(self.g1b, self.g1a, True, c)
        assert Mc0.shape[0] == Mc1.shape[0] and Mr0.shape[0] == Mr1.shape[0]
        sc = np.sqrt(0.5)
        mats = {
            'Mc0': jnp.asarray(Mc0, jnp.float32),
            'R0': jnp.asarray(Mr0.T, jnp.float32),
            'Ho': int(Mc0.shape[0]),
            'Wo': int(Mr0.shape[0]),
        }
        if r % 2 == 0 and c % 2 == 0:
            cme = np.stack([Mc0[:, 0::2], Mc0[:, 1::2],
                            Mc1[:, 0::2], Mc1[:, 1::2]], axis=0)
            rms = np.stack([sc * Mr0.T, sc * Mr1.T,
                            _rj_matrix(Mr0, sc), _rj_matrix(Mr1, sc)], axis=0)
            mats['CME'] = jnp.asarray(cme, jnp.float32)
            mats['RMS'] = jnp.asarray(rms, jnp.float32)
        self._mat_cache[key] = mats
        return mats

    def _apply_level(self, low, s, first_level):
        if low is None and s is None:
            raise ValueError('need at least one of lowpass/bandpass per level')
        if s is not None:
            assert s.ndim == 6 and s.shape[2] == 6 and s.shape[-1] == 2
            bsz, ch = s.shape[0], s.shape[1]
            h1, w1 = s.shape[3], s.shape[4]
            r, c = 2 * h1, 2 * w1
            if low is not None:
                assert low.shape[2] == r and low.shape[3] == c
        else:
            bsz, ch = low.shape[0], low.shape[1]
            r, c = low.shape[2], low.shape[3]
        mats = self._level_mats(first_level, r, c)
        n_imgs = bsz * ch
        ll = None
        if low is not None:
            ll = jnp.asarray(low, jnp.float32).reshape(n_imgs, r, c)
        hi = None
        if s is not None:
            # (B,C,6,H1,W1,2) -> (B*C,6,H1,2*W1): pure reshape (re/im in lanes).
            hi = jnp.asarray(s, jnp.float32).reshape(n_imgs, 6, h1, 2 * w1)
        out = _run_level(ll, hi, mats, (mats['Ho'], mats['Wo']))
        return out.reshape(bsz, ch, mats['Ho'], mats['Wo'])

    def __call__(self, coeffs):
        low, highs = coeffs
        J = len(highs)
        for j, s in zip(range(J - 1, 0, -1), highs[1:][::-1]):
            if s is not None and low is not None:
                r, c = low.shape[2:]
                r1, c1 = s.shape[3], s.shape[4]
                if r != r1 * 2:
                    low = low[:, :, 1:-1]
                if c != c1 * 2:
                    low = low[:, :, :, 1:-1]
            low = self._apply_level(low, s, first_level=False)
        s0 = highs[0]
        if s0 is not None and low is not None:
            r, c = low.shape[2:]
            r1, c1 = s0.shape[3], s0.shape[4]
            if r != r1 * 2:
                low = low[:, :, 1:-1]
            if c != c1 * 2:
                low = low[:, :, :, 1:-1]
        low = self._apply_level(low, s0, first_level=True)
        return low


# ----------------------------------------------------------------------------
# Deterministic filter initialization (correct lengths for near_sym_a/qshift_a).
# ----------------------------------------------------------------------------
def make_filters():
    g0o = np.array([-0.05, 0.03, 0.25, 0.54, 0.25, 0.03, -0.05], np.float32)
    g1o = np.array([-0.08, -0.29, 0.74, -0.29, -0.08], np.float32)
    g0a = np.array([0.0325, -0.0388, -0.0467, 0.2919, 0.7311,
                    0.5547, 0.0123, -0.0880, 0.0005, 0.0112], np.float32)
    g0b = g0a[::-1].copy()
    alt = np.array([(-1.0) ** n for n in range(10)], np.float32)
    g1a = (g0b * alt).astype(np.float32)
    g1b = g1a[::-1].copy()
    return g0o, g1o, g0a, g0b, g1a, g1b


# ----------------------------------------------------------------------------
# Pure-numpy reference (direct port of the pytorch_wavelets / dtcwt maths),
# used to validate the fused MXU formulation.
# ----------------------------------------------------------------------------
def _np_colfilter(X, h):
    m = len(h) // 2
    xe = _symm_pad_idx(X.shape[2], m)
    Xp = X[:, :, xe, :]
    hf = np.asarray(h, np.float64)[::-1]
    L = len(hf)
    n_out = Xp.shape[2] - L + 1
    out = np.zeros(X.shape[:2] + (n_out, X.shape[3]), np.float64)
    for k in range(L):
        out += hf[k] * Xp[:, :, k:k + n_out, :]
    return out


def _np_rowfilter(X, h):
    return np.swapaxes(_np_colfilter(np.swapaxes(X, 2, 3), h), 2, 3)


def _np_colifilt(X, ha, hb, highpass):
    B, C, r, c = X.shape
    ha = np.asarray(ha, np.float64)
    hb = np.asarray(hb, np.float64)
    m = len(ha)
    m2 = m // 2
    hao, hae = ha[1::2], ha[0::2]
    hbo, hbe = hb[1::2], hb[0::2]
    xe = _symm_pad_idx(r, m2)
    if m2 % 2 == 1:
        t = np.arange(2, r + m - 1, 2)
        ta, tb = ((t - 1, t) if highpass else (t, t - 1))
        phases = [(tb, hao), (ta, hbo), (tb, hae), (ta, hbe)]
    else:
        t = np.arange(3, r + m, 2)
        ta, tb = ((t - 1, t) if highpass else (t, t - 1))
        phases = [(tb - 2, hae), (ta - 2, hbe), (tb, hao), (ta, hbo)]
    outs = []
    for idx, hk in phases:
        Xi = X[:, :, xe[idx], :]
        hf = np.asarray(hk, np.float64)[::-1]
        L = len(hf)
        n_out = Xi.shape[2] - L + 1
        o = np.zeros((B, C, n_out, c), np.float64)
        for k in range(L):
            o += hf[k] * Xi[:, :, k:k + n_out, :]
        outs.append(o)
    y = np.stack(outs, axis=3)
    return y.reshape(B, C, 2 * r, c)


def _np_rowifilt(X, ha, hb, highpass):
    return np.swapaxes(_np_colifilt(np.swapaxes(X, 2, 3), ha, hb, highpass), 2, 3)


def _np_c2q(w1, w2):
    w1r, w1i = w1[..., 0], w1[..., 1]
    w2r, w2i = w2[..., 0], w2[..., 1]
    B, C, H, W = w1r.shape
    sc = np.sqrt(0.5)
    p_r, p_i = (w1r + w2r) * sc, (w1i + w2i) * sc
    q_r, q_i = (w1r - w2r) * sc, (w1i - w2i) * sc
    y = np.zeros((B, C, 2 * H, 2 * W), np.float64)
    y[:, :, 0::2, 0::2] = p_r
    y[:, :, 0::2, 1::2] = p_i
    y[:, :, 1::2, 0::2] = q_i
    y[:, :, 1::2, 1::2] = -q_r
    return y


def _np_quads(highs):
    return (_np_c2q(highs[:, :, 0], highs[:, :, 5]),
            _np_c2q(highs[:, :, 2], highs[:, :, 3]),
            _np_c2q(highs[:, :, 1], highs[:, :, 4]))


def _np_inv_j1(ll, highs, g0, g1):
    if highs is None:
        return _np_rowfilter(_np_colfilter(ll, g0), g0)
    lh, hl, hh = _np_quads(highs)
    if ll is None:
        return (_np_rowfilter(_np_colfilter(lh, g1), g0)
                + _np_rowfilter(_np_colfilter(hl, g0), g1)
                + _np_rowfilter(_np_colfilter(hh, g1), g1))
    return (_np_rowfilter(_np_colfilter(ll, g0) + _np_colfilter(lh, g1), g0)
            + _np_rowfilter(_np_colfilter(hl, g0) + _np_colfilter(hh, g1), g1))


def _np_inv_j2plus(ll, highs, g0a, g1a, g0b, g1b):
    if highs is None:
        return _np_rowifilt(_np_colifilt(ll, g0b, g0a, False), g0b, g0a, False)
    lh, hl, hh = _np_quads(highs)
    if ll is None:
        return (_np_rowifilt(_np_colifilt(lh, g1b, g1a, True), g0b, g0a, False)
                + _np_rowifilt(_np_colifilt(hl, g0b, g0a, False), g1b, g1a, True)
                + _np_rowifilt(_np_colifilt(hh, g1b, g1a, True), g1b, g1a, True))
    y1 = _np_colifilt(ll, g0b, g0a, False) + _np_colifilt(lh, g1b, g1a, True)
    y2 = _np_colifilt(hl, g0b, g0a, False) + _np_colifilt(hh, g1b, g1a, True)
    return _np_rowifilt(y1, g0b, g0a, False) + _np_rowifilt(y2, g1b, g1a, True)


def _np_dtcwt_inverse(coeffs, g0o, g1o, g0a, g0b, g1a, g1b):
    low, highs = coeffs
    low = None if low is None else np.asarray(low, np.float64)
    highs = [None if h is None else np.asarray(h, np.float64) for h in highs]
    J = len(highs)
    for j, s in zip(range(J - 1, 0, -1), highs[1:][::-1]):
        if s is not None and low is not None:
            r, c = low.shape[2:]
            r1, c1 = s.shape[3], s.shape[4]
            if r != r1 * 2:
                low = low[:, :, 1:-1]
            if c != c1 * 2:
                low = low[:, :, :, 1:-1]
        low = _np_inv_j2plus(low, s, g0a, g1a, g0b, g1b)
    s0 = highs[0]
    if s0 is not None and low is not None:
        r, c = low.shape[2:]
        r1, c1 = s0.shape[3], s0.shape[4]
        if r != r1 * 2:
            low = low[:, :, 1:-1]
        if c != c1 * 2:
            low = low[:, :, :, 1:-1]
    return _np_inv_j1(low, s0, g0o, g1o)


if __name__ == "__main__":
    key = jax.random.PRNGKey(0)
    B, C, H, W, J = 2, 4, 16, 16, 2
    k1, k2, k3 = jax.random.split(key, 3)
    # DTCWT pyramid shapes for a (B, C, 16, 16) image with J=2:
    yl = jax.random.normal(k1, (B, C, H // 2, W // 2), jnp.float32)          # (2,4,8,8)
    yh0 = jax.random.normal(k2, (B, C, 6, H // 2, W // 2, 2), jnp.float32)   # (2,4,6,8,8,2)
    yh1 = jax.random.normal(k3, (B, C, 6, H // 4, W // 4, 2), jnp.float32)   # (2,4,6,4,4,2)

    filters = make_filters()
    inv = DTCWTInverse(*filters)
    out = inv((yl, [yh0, yh1]))
    out = jax.block_until_ready(out)

    assert out.shape == (B, C, H, W), out.shape
    assert out.dtype == jnp.float32
    assert bool(jnp.all(jnp.isfinite(out)))

    # Validate the fused banded-matrix MXU formulation against a direct numpy
    # port of the reference maths (same filters, float64).
    ref = _np_dtcwt_inverse((np.asarray(yl), [np.asarray(yh0), np.asarray(yh1)]),
                            *filters)
    err = float(np.max(np.abs(np.asarray(out, np.float64) - ref)))
    tol = 2e-2 * max(1.0, float(np.max(np.abs(ref))))
    assert err < tol, f"mismatch vs reference: err={err} tol={tol}"

    print("KERNEL_OK")
</pallas_src>

<mosaic_0001>
module attributes {stable_mosaic.version = 11 : i64} {
  func.func @_level_kernel(%arg0: i32, %arg1: memref<4x8x8xf32, #tpu.memory_space<vmem>>, %arg2: memref<16x8xf32, #tpu.memory_space<vmem>>, %arg3: memref<8x16xf32, #tpu.memory_space<vmem>>, %arg4: memref<4x6x4x8xf32, #tpu.memory_space<vmem>>, %arg5: memref<4x16x4xf32, #tpu.memory_space<vmem>>, %arg6: memref<4x8x16xf32, #tpu.memory_space<vmem>>, %arg7: memref<4x16x16xf32, #tpu.memory_space<vmem>>) attributes {dimension_semantics = [#tpu.dimension_semantics<parallel>], iteration_bounds = array<i64: 2>, scalar_prefetch = 0 : i64, scratch_operands = 0 : i64, tpu.core_type = #tpu.core_type<tc>, window_params = [{transform_indices = @transform_0, window_bounds = array<i64: 4, 8, 8>}, {pipeline_mode = #tpu.pipeline_mode<synchronous>, transform_indices = @transform_1, window_bounds = array<i64: 16, 8>}, {pipeline_mode = #tpu.pipeline_mode<synchronous>, transform_indices = @transform_2, window_bounds = array<i64: 8, 16>}, {transform_indices = @transform_3, window_bounds = array<i64: 4, 6, 4, 8>}, {pipeline_mode = #tpu.pipeline_mode<synchronous>, transform_indices = @transform_4, window_bounds = array<i64: 4, 16, 4>}, {pipeline_mode = #tpu.pipeline_mode<synchronous>, transform_indices = @transform_5, window_bounds = array<i64: 4, 8, 16>}, {transform_indices = @transform_6, window_bounds = array<i64: 4, 16, 16>}]} {
    %c0 = arith.constant 0 : index
    %c0_0 = arith.constant 0 : index
    %0 = vector.load %arg2[%c0, %c0_0] : memref<16x8xf32, #tpu.memory_space<vmem>>, vector<16x8xf32>
    %c0_1 = arith.constant 0 : index
    %c0_2 = arith.constant 0 : index
    %c0_3 = arith.constant 0 : index
    %1 = vector.load %arg1[%c0_1, %c0_2, %c0_3] : memref<4x8x8xf32, #tpu.memory_space<vmem>>, vector<1x8x8xf32>
    %2 = vector.shape_cast %1 : vector<1x8x8xf32> to vector<8x8xf32>
    %cst = arith.constant dense<0.000000e+00> : vector<16x8xf32>
    %3 = tpu.matmul %0, %2, %cst {dimension_numbers = #tpu.dot_dimension_numbers<[1], [0], [0], [1], [0, 0, 1, 1], [], []>} : vector<16x8xf32>, vector<8x8xf32>, vector<16x8xf32> -> vector<16x8xf32>
    %c0_4 = arith.constant 0 : index
    %c0_5 = arith.constant 0 : index
    %4 = vector.load %arg3[%c0_4, %c0_5] : memref<8x16xf32, #tpu.memory_space<vmem>>, vector<8x16xf32>
    %cst_6 = arith.constant dense<0.000000e+00> : vector<16x16xf32>
    %5 = tpu.matmul %3, %4, %cst_6 {dimension_numbers = #tpu.dot_dimension_numbers<[1], [0], [0], [1], [0, 0, 1, 1], [], []>} : vector<16x8xf32>, vector<8x16xf32>, vector<16x16xf32> -> vector<16x16xf32>
    %c0_7 = arith.constant 0 : index
    %c0_8 = arith.constant 0 : index
    %c0_9 = arith.constant 0 : index
    %c0_10 = arith.constant 0 : index
    %6 = vector.load %arg4[%c0_7, %c0_8, %c0_9, %c0_10] : memref<4x6x4x8xf32, #tpu.memory_space<vmem>>, vector<1x1x4x8xf32>
    %7 = vector.shape_cast %6 : vector<1x1x4x8xf32> to vector<4x8xf32>
    %c0_11 = arith.constant 0 : index
    %c5 = arith.constant 5 : index
    %c0_12 = arith.constant 0 : index
    %c0_13 = arith.constant 0 : index
    %8 = vector.load %arg4[%c0_11, %c5, %c0_12, %c0_13] : memref<4x6x4x8xf32, #tpu.memory_space<vmem>>, vector<1x1x4x8xf32>
    %9 = vector.shape_cast %8 : vector<1x1x4x8xf32> to vector<4x8xf32>
    %10 = arith.addf %7, %9 : vector<4x8xf32>
    %11 = arith.subf %7, %9 : vector<4x8xf32>
    %c0_14 = arith.constant 0 : index
    %c0_15 = arith.constant 0 : index
    %c0_16 = arith.constant 0 : index
    %12 = vector.load %arg6[%c0_14, %c0_15, %c0_16] : memref<4x8x16xf32, #tpu.memory_space<vmem>>, vector<1x8x16xf32>
    %13 = vector.shape_cast %12 : vector<1x8x16xf32> to vector<8x16xf32>
    %cst_17 = arith.constant dense<0.000000e+00> : vector<4x16xf32>
    %14 = tpu.matmul %10, %13, %cst_17 {dimension_numbers = #tpu.dot_dimension_numbers<[1], [0], [0], [1], [0, 0, 1, 1], [], []>} : vector<4x8xf32>, vector<8x16xf32>, vector<4x16xf32> -> vector<4x16xf32>
    %c2 = arith.constant 2 : index
    %c0_18 = arith.constant 0 : index
    %c0_19 = arith.constant 0 : index
    %15 = vector.load %arg6[%c2, %c0_18, %c0_19] : memref<4x8x16xf32, #tpu.memory_space<vmem>>, vector<1x8x16xf32>
    %16 = vector.shape_cast %15 : vector<1x8x16xf32> to vector<8x16xf32>
    %cst_20 = arith.constant dense<0.000000e+00> : vector<4x16xf32>
    %17 = tpu.matmul %11, %16, %cst_20 {dimension_numbers = #tpu.dot_dimension_numbers<[1], [0], [0], [1], [0, 0, 1, 1], [], []>} : vector<4x8xf32>, vector<8x16xf32>, vector<4x16xf32> -> vector<4x16xf32>
    %c2_21 = arith.constant 2 : index
    %c0_22 = arith.constant 0 : index
    %c0_23 = arith.constant 0 : index
    %18 = vector.load %arg5[%c2_21, %c0_22, %c0_23] : memref<4x16x4xf32, #tpu.memory_space<vmem>>, vector<1x16x4xf32>
    %19 = vector.shape_cast %18 : vector<1x16x4xf32> to vector<16x4xf32>
    %cst_24 = arith.constant dense<0.000000e+00> : vector<16x16xf32>
    %20 = tpu.matmul %19, %14, %cst_24 {dimension_numbers = #tpu.dot_dimension_numbers<[1], [0], [0], [1], [0, 0, 1, 1], [], []>} : vector<16x4xf32>, vector<4x16xf32>, vector<16x16xf32> -> vector<16x16xf32>
    %c3 = arith.constant 3 : index
    %c0_25 = arith.constant 0 : index
    %c0_26 = arith.constant 0 : index
    %21 = vector.load %arg5[%c3, %c0_25, %c0_26] : memref<4x16x4xf32, #tpu.memory_space<vmem>>, vector<1x16x4xf32>
    %22 = vector.shape_cast %21 : vector<1x16x4xf32> to vector<16x4xf32>
    %cst_27 = arith.constant dense<0.000000e+00> : vector<16x16xf32>
    %23 = tpu.matmul %22, %17, %cst_27 {dimension_numbers = #tpu.dot_dimension_numbers<[1], [0], [0], [1], [0, 0, 1, 1], [], []>} : vector<16x4xf32>, vector<4x16xf32>, vector<16x16xf32> -> vector<16x16xf32>
    %24 = arith.addf %20, %23 : vector<16x16xf32>
    %25 = arith.addf %5, %24 : vector<16x16xf32>
    %c0_28 = arith.constant 0 : index
    %c2_29 = arith.constant 2 : index
    %c0_30 = arith.constant 0 : index
    %c0_31 = arith.constant 0 : index
    %26 = vector.load %arg4[%c0_28, %c2_29, %c0_30, %c0_31] : memref<4x6x4x8xf32, #tpu.memory_space<vmem>>, vector<1x1x4x8xf32>
    %27 = vector.shape_cast %26 : vector<1x1x4x8xf32> to vector<4x8xf32>
    %c0_32 = arith.constant 0 : index
    %c3_33 = arith.constant 3 : index
    %c0_34 = arith.constant 0 : index
    %c0_35 = arith.constant 0 : index
    %28 = vector.load %arg4[%c0_32, %c3_33, %c0_34, %c0_35] : memref<4x6x4x8xf32, #tpu.memory_space<vmem>>, vector<1x1x4x8xf32>
    %29 = vector.shape_cast %28 : vector<1x1x4x8xf32> to vector<4x8xf32>
    %30 = arith.addf %27, %29 : vector<4x8xf32>
    %31 = arith.subf %27, %29 : vector<4x8xf32>
    %c1 = arith.constant 1 : index
    %c0_36 = arith.constant 0 : index
    %c0_37 = arith.constant 0 : index
    %32 = vector.load %arg6[%c1, %c0_36, %c0_37] : memref<4x8x16xf32, #tpu.memory_space<vmem>>, vector<1x8x16xf32>
    %33 = vector.shape_cast %32 : vector<1x8x16xf32> to vector<8x16xf32>
    %cst_38 = arith.constant dense<0.000000e+00> : vector<4x16xf32>
    %34 = tpu.matmul %30, %33, %cst_38 {dimension_numbers = #tpu.dot_dimension_numbers<[1], [0], [0], [1], [0, 0, 1, 1], [], []>} : vector<4x8xf32>, vector<8x16xf32>, vector<4x16xf32> -> vector<4x16xf32>
    %c3_39 = arith.constant 3 : index
    %c0_40 = arith.constant 0 : index
    %c0_41 = arith.constant 0 : index
    %35 = vector.load %arg6[%c3_39, %c0_40, %c0_41] : memref<4x8x16xf32, #tpu.memory_space<vmem>>, vector<1x8x16xf32>
    %36 = vector.shape_cast %35 : vector<1x8x16xf32> to vector<8x16xf32>
    %cst_42 = arith.constant dense<0.000000e+00> : vector<4x16xf32>
    %37 = tpu.matmul %31, %36, %cst_42 {dimension_numbers = #tpu.dot_dimension_numbers<[1], [0], [0], [1], [0, 0, 1, 1], [], []>} : vector<4x8xf32>, vector<8x16xf32>, vector<4x16xf32> -> vector<4x16xf32>
    %c0_43 = arith.constant 0 : index
    %c0_44 = arith.constant 0 : index
    %c0_45 = arith.constant 0 : index
    %38 = vector.load %arg5[%c0_43, %c0_44, %c0_45] : memref<4x16x4xf32, #tpu.memory_space<vmem>>, vector<1x16x4xf32>
    %39 = vector.shape_cast %38 : vector<1x16x4xf32> to vector<16x4xf32>
    %cst_46 = arith.constant dense<0.000000e+00> : vector<16x16xf32>
    %40 = tpu.matmul %39, %34, %cst_46 {dimension_numbers = #tpu.dot_dimension_numbers<[1], [0], [0], [1], [0, 0, 1, 1], [], []>} : vector<16x4xf32>, vector<4x16xf32>, vector<16x16xf32> -> vector<16x16xf32>
    %c1_47 = arith.constant 1 : index
    %c0_48 = arith.constant 0 : index
    %c0_49 = arith.constant 0 : index
    %41 = vector.load %arg5[%c1_47, %c0_48, %c0_49] : memref<4x16x4xf32, #tpu.memory_space<vmem>>, vector<1x16x4xf32>
    %42 = vector.shape_cast %41 : vector<1x16x4xf32> to vector<16x4xf32>
    %cst_50 = arith.constant dense<0.000000e+00> : vector<16x16xf32>
    %43 = tpu.matmul %42, %37, %cst_50 {dimension_numbers = #tpu.dot_dimension_numbers<[1], [0], [0], [1], [0, 0, 1, 1], [], []>} : vector<16x4xf32>, vector<4x16xf32>, vector<16x16xf32> -> vector<16x16xf32>
    %44 = arith.addf %40, %43 : vector<16x16xf32>
    %45 = arith.addf %25, %44 : vector<16x16xf32>
    %c0_51 = arith.constant 0 : index
    %c1_52 = arith.constant 1 : index
    %c0_53 = arith.constant 0 : index
    %c0_54 = arith.constant 0 : index
    %46 = vector.load %arg4[%c0_51, %c1_52, %c0_53, %c0_54] : memref<4x6x4x8xf32, #tpu.memory_space<vmem>>, vector<1x1x4x8xf32>
    %47 = vector.shape_cast %46 : vector<1x1x4x8xf32> to vector<4x8xf32>
    %c0_55 = arith.constant 0 : index
    %c4 = arith.constant 4 : index
    %c0_56 = arith.constant 0 : index
    %c0_57 = arith.constant 0 : index
    %48 = vector.load %arg4[%c0_55, %c4, %c0_56, %c0_57] : memref<4x6x4x8xf32, #tpu.memory_space<vmem>>, vector<1x1x4x8xf32>
    %49 = vector.shape_cast %48 : vector<1x1x4x8xf32> to vector<4x8xf32>
    %50 = arith.addf %47, %49 : vector<4x8xf32>
    %51 = arith.subf %47, %49 : vector<4x8xf32>
    %c1_58 = arith.constant 1 : index
    %c0_59 = arith.constant 0 : index
    %c0_60 = arith.constant 0 : index
    %52 = vector.load %arg6[%c1_58, %c0_59, %c0_60] : memref<4x8x16xf32, #tpu.memory_space<vmem>>, vector<1x8x16xf32>
    %53 = vector.shape_cast %52 : vector<1x8x16xf32> to vector<8x16xf32>
    %cst_61 = arith.constant dense<0.000000e+00> : vector<4x16xf32>
    %54 = tpu.matmul %50, %53, %cst_61 {dimension_numbers = #tpu.dot_dimension_numbers<[1], [0], [0], [1], [0, 0, 1, 1], [], []>} : vector<4x8xf32>, vector<8x16xf32>, vector<4x16xf32> -> vector<4x16xf32>
    %c3_62 = arith.constant 3 : index
    %c0_63 = arith.constant 0 : index
    %c0_64 = arith.constant 0 : index
    %55 = vector.load %arg6[%c3_62, %c0_63, %c0_64] : memref<4x8x16xf32, #tpu.memory_space<vmem>>, vector<1x8x16xf32>
    %56 = vector.shape_cast %55 : vector<1x8x16xf32> to vector<8x16xf32>
    %cst_65 = arith.constant dense<0.000000e+00> : vector<4x16xf32>
    %57 = tpu.matmul %51, %56, %cst_65 {dimension_numbers = #tpu.dot_dimension_numbers<[1], [0], [0], [1], [0, 0, 1, 1], [], []>} : vector<4x8xf32>, vector<8x16xf32>, vector<4x16xf32> -> vector<4x16xf32>
    %c2_66 = arith.constant 2 : index
    %c0_67 = arith.constant 0 : index
    %c0_68 = arith.constant 0 : index
    %58 = vector.load %arg5[%c2_66, %c0_67, %c0_68] : memref<4x16x4xf32, #tpu.memory_space<vmem>>, vector<1x16x4xf32>
    %59 = vector.shape_cast %58 : vector<1x16x4xf32> to vector<16x4xf32>
    %cst_69 = arith.constant dense<0.000000e+00> : vector<16x16xf32>
    %60 = tpu.matmul %59, %54, %cst_69 {dimension_numbers = #tpu.dot_dimension_numbers<[1], [0], [0], [1], [0, 0, 1, 1], [], []>} : vector<16x4xf32>, vector<4x16xf32>, vector<16x16xf32> -> vector<16x16xf32>
    %c3_70 = arith.constant 3 : index
    %c0_71 = arith.constant 0 : index
    %c0_72 = arith.constant 0 : index
    %61 = vector.load %arg5[%c3_70, %c0_71, %c0_72] : memref<4x16x4xf32, #tpu.memory_space<vmem>>, vector<1x16x4xf32>
    %62 = vector.shape_cast %61 : vector<1x16x4xf32> to vector<16x4xf32>
    %cst_73 = arith.constant dense<0.000000e+00> : vector<16x16xf32>
    %63 = tpu.matmul %62, %57, %cst_73 {dimension_numbers = #tpu.dot_dimension_numbers<[1], [0], [0], [1], [0, 0, 1, 1], [], []>} : vector<16x4xf32>, vector<4x16xf32>, vector<16x16xf32> -> vector<16x16xf32>
    %64 = arith.addf %60, %63 : vector<16x16xf32>
    %65 = arith.addf %45, %64 : vector<16x16xf32>
    %c0_74 = arith.constant 0 : index
    %c0_75 = arith.constant 0 : index
    %c0_76 = arith.constant 0 : index
    %66 = vector.load %arg7[%c0_74, %c0_75, %c0_76] : memref<4x16x16xf32, #tpu.memory_space<vmem>>, vector<1x16x16xf32>
    %67 = vector.shape_cast %66 : vector<1x16x16xf32> to vector<16x16xf32>
    %68 = vector.shape_cast %65 : vector<16x16xf32> to vector<1x16x16xf32>
    tpu.vector_store %arg7[%c0_74, %c0_75, %c0_76], %68 {strides = array<i32>} : memref<4x16x16xf32, #tpu.memory_space<vmem>>, vector<1x16x16xf32>,
    %c0_77 = arith.constant 0 : index
    %c0_78 = arith.constant 0 : index
    %69 = vector.load %arg2[%c0_77, %c0_78] : memref<16x8xf32, #tpu.memory_space<vmem>>, vector<16x8xf32>
    %c1_79 = arith.constant 1 : index
    %c0_80 = arith.constant 0 : index
    %c0_81 = arith.constant 0 : index
    %70 = vector.load %arg1[%c1_79, %c0_80, %c0_81] : memref<4x8x8xf32, #tpu.memory_space<vmem>>, vector<1x8x8xf32>
    %71 = vector.shape_cast %70 : vector<1x8x8xf32> to vector<8x8xf32>
    %cst_82 = arith.constant dense<0.000000e+00> : vector<16x8xf32>
    %72 = tpu.matmul %69, %71, %cst_82 {dimension_numbers = #tpu.dot_dimension_numbers<[1], [0], [0], [1], [0, 0, 1, 1], [], []>} : vector<16x8xf32>, vector<8x8xf32>, vector<16x8xf32> -> vector<16x8xf32>
    %c0_83 = arith.constant 0 : index
    %c0_84 = arith.constant 0 : index
    %73 = vector.load %arg3[%c0_83, %c0_84] : memref<8x16xf32, #tpu.memory_space<vmem>>, vector<8x16xf32>
    %cst_85 = arith.constant dense<0.000000e+00> : vector<16x16xf32>
    %74 = tpu.matmul %72, %73, %cst_85 {dimension_numbers = #tpu.dot_dimension_numbers<[1], [0], [0], [1], [0, 0, 1, 1], [], []>} : vector<16x8xf32>, vector<8x16xf32>, vector<16x16xf32> -> vector<16x16xf32>
    %c1_86 = arith.constant 1 : index
    %c0_87 = arith.constant 0 : index
    %c0_88 = arith.constant 0 : index
    %c0_89 = arith.constant 0 : index
    %75 = vector.load %arg4[%c1_86, %c0_87, %c0_88, %c0_89] : memref<4x6x4x8xf32, #tpu.memory_space<vmem>>, vector<1x1x4x8xf32>
    %76 = vector.shape_cast %75 : vector<1x1x4x8xf32> to vector<4x8xf32>
    %c1_90 = arith.constant 1 : index
    %c5_91 = arith.constant 5 : index
    %c0_92 = arith.constant 0 : index
    %c0_93 = arith.constant 0 : index
    %77 = vector.load %arg4[%c1_90, %c5_91, %c0_92, %c0_93] : memref<4x6x4x8xf32, #tpu.memory_space<vmem>>, vector<1x1x4x8xf32>
    %78 = vector.shape_cast %77 : vector<1x1x4x8xf32> to vector<4x8xf32>
    %79 = arith.addf %76, %78 : vector<4x8xf32>
    %80 = arith.subf %76, %78 : vector<4x8xf32>
    %c0_94 = arith.constant 0 : index
    %c0_95 = arith.constant 0 : index
    %c0_96 = arith.constant 0 : index
    %81 = vector.load %arg6[%c0_94, %c0_95, %c0_96] : memref<4x8x16xf32, #tpu.memory_space<vmem>>, vector<1x8x16xf32>
    %82 = vector.shape_cast %81 : vector<1x8x16xf32> to vector<8x16xf32>
    %cst_97 = arith.constant dense<0.000000e+00> : vector<4x16xf32>
    %83 = tpu.matmul %79, %82, %cst_97 {dimension_numbers = #tpu.dot_dimension_numbers<[1], [0], [0], [1], [0, 0, 1, 1], [], []>} : vector<4x8xf32>, vector<8x16xf32>, vector<4x16xf32> -> vector<4x16xf32>
    %c2_98 = arith.constant 2 : index
    %c0_99 = arith.constant 0 : index
    %c0_100 = arith.constant 0 : index
    %84 = vector.load %arg6[%c2_98, %c0_99, %c0_100] : memref<4x8x16xf32, #tpu.memory_space<vmem>>, vector<1x8x16xf32>
    %85 = vector.shape_cast %84 : vector<1x8x16xf32> to vector<8x16xf32>
    %cst_101 = arith.constant dense<0.000000e+00> : vector<4x16xf32>
    %86 = tpu.matmul %80, %85, %cst_101 {dimension_numbers = #tpu.dot_dimension_numbers<[1], [0], [0], [1], [0, 0, 1, 1], [], []>} : vector<4x8xf32>, vector<8x16xf32>, vector<4x16xf32> -> vector<4x16xf32>
    %c2_102 = arith.constant 2 : index
    %c0_103 = arith.constant 0 : index
    %c0_104 = arith.constant 0 : index
    %87 = vector.load %arg5[%c2_102, %c0_103, %c0_104] : memref<4x16x4xf32, #tpu.memory_space<vmem>>, vector<1x16x4xf32>
    %88 = vector.shape_cast %87 : vector<1x16x4xf32> to vector<16x4xf32>
    %cst_105 = arith.constant dense<0.000000e+00> : vector<16x16xf32>
    %89 = tpu.matmul %88, %83, %cst_105 {dimension_numbers = #tpu.dot_dimension_numbers<[1], [0], [0], [1], [0, 0, 1, 1], [], []>} : vector<16x4xf32>, vector<4x16xf32>, vector<16x16xf32> -> vector<16x16xf32>
    %c3_106 = arith.constant 3 : index
    %c0_107 = arith.constant 0 : index
    %c0_108 = arith.constant 0 : index
    %90 = vector.load %arg5[%c3_106, %c0_107, %c0_108] : memref<4x16x4xf32, #tpu.memory_space<vmem>>, vector<1x16x4xf32>
    %91 = vector.shape_cast %90 : vector<1x16x4xf32> to vector<16x4xf32>
    %cst_109 = arith.constant dense<0.000000e+00> : vector<16x16xf32>
    %92 = tpu.matmul %91, %86, %cst_109 {dimension_numbers = #tpu.dot_dimension_numbers<[1], [0], [0], [1], [0, 0, 1, 1], [], []>} : vector<16x4xf32>, vector<4x16xf32>, vector<16x16xf32> -> vector<16x16xf32>
    %93 = arith.addf %89, %92 : vector<16x16xf32>
    %94 = arith.addf %74, %93 : vector<16x16xf32>
    %c1_110 = arith.constant 1 : index
    %c2_111 = arith.constant 2 : index
    %c0_112 = arith.constant 0 : index
    %c0_113 = arith.constant 0 : index
    %95 = vector.load %arg4[%c1_110, %c2_111, %c0_112, %c0_113] : memref<4x6x4x8xf32, #tpu.memory_space<vmem>>, vector<1x1x4x8xf32>
    %96 = vector.shape_cast %95 : vector<1x1x4x8xf32> to vector<4x8xf32>
    %c1_114 = arith.constant 1 : index
    %c3_115 = arith.constant 3 : index
    %c0_116 = arith.constant 0 : index
    %c0_117 = arith.constant 0 : index
    %97 = vector.load %arg4[%c1_114, %c3_115, %c0_116, %c0_117] : memref<4x6x4x8xf32, #tpu.memory_space<vmem>>, vector<1x1x4x8xf32>
    %98 = vector.shape_cast %97 : vector<1x1x4x8xf32> to vector<4x8xf32>
    %99 = arith.addf %96, %98 : vector<4x8xf32>
    %100 = arith.subf %96, %98 : vector<4x8xf32>
    %c1_118 = arith.constant 1 : index
    %c0_119 = arith.constant 0 : index
    %c0_120 = arith.constant 0 : index
    %101 = vector.load %arg6[%c1_118, %c0_119, %c0_120] : memref<4x8x16xf32, #tpu.memory_space<vmem>>, vector<1x8x16xf32>
    %102 = vector.shape_cast %101 : vector<1x8x16xf32> to vector<8x16xf32>
    %cst_121 = arith.constant dense<0.000000e+00> : vector<4x16xf32>
    %103 = tpu.matmul %99, %102, %cst_121 {dimension_numbers = #tpu.dot_dimension_numbers<[1], [0], [0], [1], [0, 0, 1, 1], [], []>} : vector<4x8xf32>, vector<8x16xf32>, vector<4x16xf32> -> vector<4x16xf32>
    %c3_122 = arith.constant 3 : index
    %c0_123 = arith.constant 0 : index
    %c0_124 = arith.constant 0 : index
    %104 = vector.load %arg6[%c3_122, %c0_123, %c0_124] : memref<4x8x16xf32, #tpu.memory_space<vmem>>, vector<1x8x16xf32>
    %105 = vector.shape_cast %104 : vector<1x8x16xf32> to vector<8x16xf32>
    %cst_125 = arith.constant dense<0.000000e+00> : vector<4x16xf32>
    %106 = tpu.matmul %100, %105, %cst_125 {dimension_numbers = #tpu.dot_dimension_numbers<[1], [0], [0], [1], [0, 0, 1, 1], [], []>} : vector<4x8xf32>, vector<8x16xf32>, vector<4x16xf32> -> vector<4x16xf32>
    %c0_126 = arith.constant 0 : index
    %c0_127 = arith.constant 0 : index
    %c0_128 = arith.constant 0 : index
    %107 = vector.load %arg5[%c0_126, %c0_127, %c0_128] : memref<4x16x4xf32, #tpu.memory_space<vmem>>, vector<1x16x4xf32>
    %108 = vector.shape_cast %107 : vector<1x16x4xf32> to vector<16x4xf32>
    %cst_129 = arith.constant dense<0.000000e+00> : vector<16x16xf32>
    %109 = tpu.matmul %108, %103, %cst_129 {dimension_numbers = #tpu.dot_dimension_numbers<[1], [0], [0], [1], [0, 0, 1, 1], [], []>} : vector<16x4xf32>, vector<4x16xf32>, vector<16x16xf32> -> vector<16x16xf32>
    %c1_130 = arith.constant 1 : index
    %c0_131 = arith.constant 0 : index
    %c0_132 = arith.constant 0 : index
    %110 = vector.load %arg5[%c1_130, %c0_131, %c0_132] : memref<4x16x4xf32, #tpu.memory_space<vmem>>, vector<1x16x4xf32>
    %111 = vector.shape_cast %110 : vector<1x16x4xf32> to vector<16x4xf32>
    %cst_133 = arith.constant dense<0.000000e+00> : vector<16x16xf32>
    %112 = tpu.matmul %111, %106, %cst_133 {dimension_numbers = #tpu.dot_dimension_numbers<[1], [0], [0], [1], [0, 0, 1, 1], [], []>} : vector<16x4xf32>, vector<4x16xf32>, vector<16x16xf32> -> vector<16x16xf32>
    %113 = arith.addf %109, %112 : vector<16x16xf32>
    %114 = arith.addf %94, %113 : vector<16x16xf32>
    %c1_134 = arith.constant 1 : index
    %c1_135 = arith.constant 1 : index
    %c0_136 = arith.constant 0 : index
    %c0_137 = arith.constant 0 : index
    %115 = vector.load %arg4[%c1_134, %c1_135, %c0_136, %c0_137] : memref<4x6x4x8xf32, #tpu.memory_space<vmem>>, vector<1x1x4x8xf32>
    %116 = vector.shape_cast %115 : vector<1x1x4x8xf32> to vector<4x8xf32>
    %c1_138 = arith.constant 1 : index
    %c4_139 = arith.constant 4 : index
    %c0_140 = arith.constant 0 : index
    %c0_141 = arith.constant 0 : index
    %117 = vector.load %arg4[%c1_138, %c4_139, %c0_140, %c0_141] : memref<4x6x4x8xf32, #tpu.memory_space<vmem>>, vector<1x1x4x8xf32>
    %118 = vector.shape_cast %117 : vector<1x1x4x8xf32> to vector<4x8xf32>
    %119 = arith.addf %116, %118 : vector<4x8xf32>
    %120 = arith.subf %116, %118 : vector<4x8xf32>
    %c1_142 = arith.constant 1 : index
    %c0_143 = arith.constant 0 : index
    %c0_144 = arith.constant 0 : index
    %121 = vector.load %arg6[%c1_142, %c0_143, %c0_144] : memref<4x8x16xf32, #tpu.memory_space<vmem>>, vector<1x8x16xf32>
    %122 = vector.shape_cast %121 : vector<1x8x16xf32> to vector<8x16xf32>
    %cst_145 = arith.constant dense<0.000000e+00> : vector<4x16xf32>
    %123 = tpu.matmul %119, %122, %cst_145 {dimension_numbers = #tpu.dot_dimension_numbers<[1], [0], [0], [1], [0, 0, 1, 1], [], []>} : vector<4x8xf32>, vector<8x16xf32>, vector<4x16xf32> -> vector<4x16xf32>
    %c3_146 = arith.constant 3 : index
    %c0_147 = arith.constant 0 : index
    %c0_148 = arith.constant 0 : index
    %124 = vector.load %arg6[%c3_146, %c0_147, %c0_148] : memref<4x8x16xf32, #tpu.memory_space<vmem>>, vector<1x8x16xf32>
    %125 = vector.shape_cast %124 : vector<1x8x16xf32> to vector<8x16xf32>
    %cst_149 = arith.constant dense<0.000000e+00> : vector<4x16xf32>
    %126 = tpu.matmul %120, %125, %cst_149 {dimension_numbers = #tpu.dot_dimension_numbers<[1], [0], [0], [1], [0, 0, 1, 1], [], []>} : vector<4x8xf32>, vector<8x16xf32>, vector<4x16xf32> -> vector<4x16xf32>
    %c2_150 = arith.constant 2 : index
    %c0_151 = arith.constant 0 : index
    %c0_152 = arith.constant 0 : index
    %127 = vector.load %arg5[%c2_150, %c0_151, %c0_152] : memref<4x16x4xf32, #tpu.memory_space<vmem>>, vector<1x16x4xf32>
    %128 = vector.shape_cast %127 : vector<1x16x4xf32> to vector<16x4xf32>
    %cst_153 = arith.constant dense<0.000000e+00> : vector<16x16xf32>
    %129 = tpu.matmul %128, %123, %cst_153 {dimension_numbers = #tpu.dot_dimension_numbers<[1], [0], [0], [1], [0, 0, 1, 1], [], []>} : vector<16x4xf32>, vector<4x16xf32>, vector<16x16xf32> -> vector<16x16xf32>
    %c3_154 = arith.constant 3 : index
    %c0_155 = arith.constant 0 : index
    %c0_156 = arith.constant 0 : index
    %130 = vector.load %arg5[%c3_154, %c0_155, %c0_156] : memref<4x16x4xf32, #tpu.memory_space<vmem>>, vector<1x16x4xf32>
    %131 = vector.shape_cast %130 : vector<1x16x4xf32> to vector<16x4xf32>
    %cst_157 = arith.constant dense<0.000000e+00> : vector<16x16xf32>
    %132 = tpu.matmul %131, %126, %cst_157 {dimension_numbers = #tpu.dot_dimension_numbers<[1], [0], [0], [1], [0, 0, 1, 1], [], []>} : vector<16x4xf32>, vector<4x16xf32>, vector<16x16xf32> -> vector<16x16xf32>
    %133 = arith.addf %129, %132 : vector<16x16xf32>
    %134 = arith.addf %114, %133 : vector<16x16xf32>
    %c1_158 = arith.constant 1 : index
    %c0_159 = arith.constant 0 : index
    %c0_160 = arith.constant 0 : index
    %135 = vector.load %arg7[%c1_158, %c0_159, %c0_160] : memref<4x16x16xf32, #tpu.memory_space<vmem>>, vector<1x16x16xf32>
    %136 = vector.shape_cast %135 : vector<1x16x16xf32> to vector<16x16xf32>
    %137 = vector.shape_cast %134 : vector<16x16xf32> to vector<1x16x16xf32>
    tpu.vector_store %arg7[%c1_158, %c0_159, %c0_160], %137 {strides = array<i32>} : memref<4x16x16xf32, #tpu.memory_space<vmem>>, vector<1x16x16xf32>,
    %c0_161 = arith.constant 0 : index
    %c0_162 = arith.constant 0 : index
    %138 = vector.load %arg2[%c0_161, %c0_162] : memref<16x8xf32, #tpu.memory_space<vmem>>, vector<16x8xf32>
    %c2_163 = arith.constant 2 : index
    %c0_164 = arith.constant 0 : index
    %c0_165 = arith.constant 0 : index
    %139 = vector.load %arg1[%c2_163, %c0_164, %c0_165] : memref<4x8x8xf32, #tpu.memory_space<vmem>>, vector<1x8x8xf32>
    %140 = vector.shape_cast %139 : vector<1x8x8xf32> to vector<8x8xf32>
    %cst_166 = arith.constant dense<0.000000e+00> : vector<16x8xf32>
    %141 = tpu.matmul %138, %140, %cst_166 {dimension_numbers = #tpu.dot_dimension_numbers<[1], [0], [0], [1], [0, 0, 1, 1], [], []>} : vector<16x8xf32>, vector<8x8xf32>, vector<16x8xf32> -> vector<16x8xf32>
    %c0_167 = arith.constant 0 : index
    %c0_168 = arith.constant 0 : index
    %142 = vector.load %arg3[%c0_167, %c0_168] : memref<8x16xf32, #tpu.memory_space<vmem>>, vector<8x16xf32>
    %cst_169 = arith.constant dense<0.000000e+00> : vector<16x16xf32>
    %143 = tpu.matmul %141, %142, %cst_169 {dimension_numbers = #tpu.dot_dimension_numbers<[1], [0], [0], [1], [0, 0, 1, 1], [], []>} : vector<16x8xf32>, vector<8x16xf32>, vector<16x16xf32> -> vector<16x16xf32>
    %c2_170 = arith.constant 2 : index
    %c0_171 = arith.constant 0 : index
    %c0_172 = arith.constant 0 : index
    %c0_173 = arith.constant 0 : index
    %144 = vector.load %arg4[%c2_170, %c0_171, %c0_172, %c0_173] : memref<4x6x4x8xf32, #tpu.memory_space<vmem>>, vector<1x1x4x8xf32>
    %145 = vector.shape_cast %144 : vector<1x1x4x8xf32> to vector<4x8xf32>
    %c2_174 = arith.constant 2 : index
    %c5_175 = arith.constant 5 : index
    %c0_176 = arith.constant 0 : index
    %c0_177 = arith.constant 0 : index
    %146 = vector.load %arg4[%c2_174, %c5_175, %c0_176, %c0_177] : memref<4x6x4x8xf32, #tpu.memory_space<vmem>>, vector<1x1x4x8xf32>
    %147 = vector.shape_cast %146 : vector<1x1x4x8xf32> to vector<4x8xf32>
    %148 = arith.addf %145, %147 : vector<4x8xf32>
    %149 = arith.subf %145, %147 : vector<4x8xf32>
    %c0_178 = arith.constant 0 : index
    %c0_179 = arith.constant 0 : index
    %c0_180 = arith.constant 0 : index
    %150 = vector.load %arg6[%c0_178, %c0_179, %c0_180] : memref<4x8x16xf32, #tpu.memory_space<vmem>>, vector<1x8x16xf32>
    %151 = vector.shape_cast %150 : vector<1x8x16xf32> to vector<8x16xf32>
    %cst_181 = arith.constant dense<0.000000e+00> : vector<4x16xf32>
    %152 = tpu.matmul %148, %151, %cst_181 {dimension_numbers = #tpu.dot_dimension_numbers<[1], [0], [0], [1], [0, 0, 1, 1], [], []>} : vector<4x8xf32>, vector<8x16xf32>, vector<4x16xf32> -> vector<4x16xf32>
    %c2_182 = arith.constant 2 : index
    %c0_183 = arith.constant 0 : index
    %c0_184 = arith.constant 0 : index
    %153 = vector.load %arg6[%c2_182, %c0_183, %c0_184] : memref<4x8x16xf32, #tpu.memory_space<vmem>>, vector<1x8x16xf32>
    %154 = vector.shape_cast %153 : vector<1x8x16xf32> to vector<8x16xf32>
    %cst_185 = arith.constant dense<0.000000e+00> : vector<4x16xf32>
    %155 = tpu.matmul %149, %154, %cst_185 {dimension_numbers = #tpu.dot_dimension_numbers<[1], [0], [0], [1], [0, 0, 1, 1], [], []>} : vector<4x8xf32>, vector<8x16xf32>, vector<4x16xf32> -> vector<4x16xf32>
    %c2_186 = arith.constant 2 : index
    %c0_187 = arith.constant 0 : index
    %c0_188 = arith.constant 0 : index
    %156 = vector.load %arg5[%c2_186, %c0_187, %c0_188] : memref<4x16x4xf32, #tpu.memory_space<vmem>>, vector<1x16x4xf32>
    %157 = vector.shape_cast %156 : vector<1x16x4xf32> to vector<16x4xf32>
    %cst_189 = arith.constant dense<0.000000e+00> : vector<16x16xf32>
    %158 = tpu.matmul %157, %152, %cst_189 {dimension_numbers = #tpu.dot_dimension_numbers<[1], [0], [0], [1], [0, 0, 1, 1], [], []>} : vector<16x4xf32>, vector<4x16xf32>, vector<16x16xf32> -> vector<16x16xf32>
    %c3_190 = arith.constant 3 : index
    %c0_191 = arith.constant 0 : index
    %c0_192 = arith.constant 0 : index
    %159 = vector.load %arg5[%c3_190, %c0_191, %c0_192] : memref<4x16x4xf32, #tpu.memory_space<vmem>>, vector<1x16x4xf32>
    %160 = vector.shape_cast %159 : vector<1x16x4xf32> to vector<16x4xf32>
    %cst_193 = arith.constant dense<0.000000e+00> : vector<16x16xf32>
    %161 = tpu.matmul %160, %155, %cst_193 {dimension_numbers = #tpu.dot_dimension_numbers<[1], [0], [0], [1], [0, 0, 1, 1], [], []>} : vector<16x4xf32>, vector<4x16xf32>, vector<16x16xf32> -> vector<16x16xf32>
    %162 = arith.addf %158, %161 : vector<16x16xf32>
    %163 = arith.addf %143, %162 : vector<16x16xf32>
    %c2_194 = arith.constant 2 : index
    %c2_195 = arith.constant 2 : index
    %c0_196 = arith.constant 0 : index
    %c0_197 = arith.constant 0 : index
    %164 = vector.load %arg4[%c2_194, %c2_195, %c0_196, %c0_197] : memref<4x6x4x8xf32, #tpu.memory_space<vmem>>, vector<1x1x4x8xf32>
    %165 = vector.shape_cast %164 : vector<1x1x4x8xf32> to vector<4x8xf32>
    %c2_198 = arith.constant 2 : index
    %c3_199 = arith.constant 3 : index
    %c0_200 = arith.constant 0 : index
    %c0_201 = arith.constant 0 : index
    %166 = vector.load %arg4[%c2_198, %c3_199, %c0_200, %c0_201] : memref<4x6x4x8xf32, #tpu.memory_space<vmem>>, vector<1x1x4x8xf32>
    %167 = vector.shape_cast %166 : vector<1x1x4x8xf32> to vector<4x8xf32>
    %168 = arith.addf %165, %167 : vector<4x8xf32>
    %169 = arith.subf %165, %167 : vector<4x8xf32>
    %c1_202 = arith.constant 1 : index
    %c0_203 = arith.constant 0 : index
    %c0_204 = arith.constant 0 : index
    %170 = vector.load %arg6[%c1_202, %c0_203, %c0_204] : memref<4x8x16xf32, #tpu.memory_space<vmem>>, vector<1x8x16xf32>
    %171 = vector.shape_cast %170 : vector<1x8x16xf32> to vector<8x16xf32>
    %cst_205 = arith.constant dense<0.000000e+00> : vector<4x16xf32>
    %172 = tpu.matmul %168, %171, %cst_205 {dimension_numbers = #tpu.dot_dimension_numbers<[1], [0], [0], [1], [0, 0, 1, 1], [], []>} : vector<4x8xf32>, vector<8x16xf32>, vector<4x16xf32> -> vector<4x16xf32>
    %c3_206 = arith.constant 3 : index
    %c0_207 = arith.constant 0 : index
    %c0_208 = arith.constant 0 : index
    %173 = vector.load %arg6[%c3_206, %c0_207, %c0_208] : memref<4x8x16xf32, #tpu.memory_space<vmem>>, vector<1x8x16xf32>
    %174 = vector.shape_cast %173 : vector<1x8x16xf32> to vector<8x16xf32>
    %cst_209 = arith.constant dense<0.000000e+00> : vector<4x16xf32>
    %175 = tpu.matmul %169, %174, %cst_209 {dimension_numbers = #tpu.dot_dimension_numbers<[1], [0], [0], [1], [0, 0, 1, 1], [], []>} : vector<4x8xf32>, vector<8x16xf32>, vector<4x16xf32> -> vector<4x16xf32>
    %c0_210 = arith.constant 0 : index
    %c0_211 = arith.constant 0 : index
    %c0_212 = arith.constant 0 : index
    %176 = vector.load %arg5[%c0_210, %c0_211, %c0_212] : memref<4x16x4xf32, #tpu.memory_space<vmem>>, vector<1x16x4xf32>
    %177 = vector.shape_cast %176 : vector<1x16x4xf32> to vector<16x4xf32>
    %cst_213 = arith.constant dense<0.000000e+00> : vector<16x16xf32>
    %178 = tpu.matmul %177, %172, %cst_213 {dimension_numbers = #tpu.dot_dimension_numbers<[1], [0], [0], [1], [0, 0, 1, 1], [], []>} : vector<16x4xf32>, vector<4x16xf32>, vector<16x16xf32> -> vector<16x16xf32>
    %c1_214 = arith.constant 1 : index
    %c0_215 = arith.constant 0 : index
    %c0_216 = arith.constant 0 : index
    %179 = vector.load %arg5[%c1_214, %c0_215, %c0_216] : memref<4x16x4xf32, #tpu.memory_space<vmem>>, vector<1x16x4xf32>
    %180 = vector.shape_cast %179 : vector<1x16x4xf32> to vector<16x4xf32>
    %cst_217 = arith.constant dense<0.000000e+00> : vector<16x16xf32>
    %181 = tpu.matmul %180, %175, %cst_217 {dimension_numbers = #tpu.dot_dimension_numbers<[1], [0], [0], [1], [0, 0, 1, 1], [], []>} : vector<16x4xf32>, vector<4x16xf32>, vector<16x16xf32> -> vector<16x16xf32>
    %182 = arith.addf %178, %181 : vector<16x16xf32>
    %183 = arith.addf %163, %182 : vector<16x16xf32>
    %c2_218 = arith.constant 2 : index
    %c1_219 = arith.constant 1 : index
    %c0_220 = arith.constant 0 : index
    %c0_221 = arith.constant 0 : index
    %184 = vector.load %arg4[%c2_218, %c1_219, %c0_220, %c0_221] : memref<4x6x4x8xf32, #tpu.memory_space<vmem>>, vector<1x1x4x8xf32>
    %185 = vector.shape_cast %184 : vector<1x1x4x8xf32> to vector<4x8xf32>
    %c2_222 = arith.constant 2 : index
    %c4_223 = arith.constant 4 : index
    %c0_224 = arith.constant 0 : index
    %c0_225 = arith.constant 0 : index
    %186 = vector.load %arg4[%c2_222, %c4_223, %c0_224, %c0_225] : memref<4x6x4x8xf32, #tpu.memory_space<vmem>>, vector<1x1x4x8xf32>
    %187 = vector.shape_cast %186 : vector<1x1x4x8xf32> to vector<4x8xf32>
    %188 = arith.addf %185, %187 : vector<4x8xf32>
    %189 = arith.subf %185, %187 : vector<4x8xf32>
    %c1_226 = arith.constant 1 : index
    %c0_227 = arith.constant 0 : index
    %c0_228 = arith.constant 0 : index
    %190 = vector.load %arg6[%c1_226, %c0_227, %c0_228] : memref<4x8x16xf32, #tpu.memory_space<vmem>>, vector<1x8x16xf32>
    %191 = vector.shape_cast %190 : vector<1x8x16xf32> to vector<8x16xf32>
    %cst_229 = arith.constant dense<0.000000e+00> : vector<4x16xf32>
    %192 = tpu.matmul %188, %191, %cst_229 {dimension_numbers = #tpu.dot_dimension_numbers<[1], [0], [0], [1], [0, 0, 1, 1], [], []>} : vector<4x8xf32>, vector<8x16xf32>, vector<4x16xf32> -> vector<4x16xf32>
    %c3_230 = arith.constant 3 : index
    %c0_231 = arith.constant 0 : index
    %c0_232 = arith.constant 0 : index
    %193 = vector.load %arg6[%c3_230, %c0_231, %c0_232] : memref<4x8x16xf32, #tpu.memory_space<vmem>>, vector<1x8x16xf32>
    %194 = vector.shape_cast %193 : vector<1x8x16xf32> to vector<8x16xf32>
    %cst_233 = arith.constant dense<0.000000e+00> : vector<4x16xf32>
    %195 = tpu.matmul %189, %194, %cst_233 {dimension_numbers = #tpu.dot_dimension_numbers<[1], [0], [0], [1], [0, 0, 1, 1], [], []>} : vector<4x8xf32>, vector<8x16xf32>, vector<4x16xf32> -> vector<4x16xf32>
    %c2_234 = arith.constant 2 : index
    %c0_235 = arith.constant 0 : index
    %c0_236 = arith.constant 0 : index
    %196 = vector.load %arg5[%c2_234, %c0_235, %c0_236] : memref<4x16x4xf32, #tpu.memory_space<vmem>>, vector<1x16x4xf32>
    %197 = vector.shape_cast %196 : vector<1x16x4xf32> to vector<16x4xf32>
    %cst_237 = arith.constant dense<0.000000e+00> : vector<16x16xf32>
    %198 = tpu.matmul %197, %192, %cst_237 {dimension_numbers = #tpu.dot_dimension_numbers<[1], [0], [0], [1], [0, 0, 1, 1], [], []>} : vector<16x4xf32>, vector<4x16xf32>, vector<16x16xf32> -> vector<16x16xf32>
    %c3_238 = arith.constant 3 : index
    %c0_239 = arith.constant 0 : index
    %c0_240 = arith.constant 0 : index
    %199 = vector.load %arg5[%c3_238, %c0_239, %c0_240] : memref<4x16x4xf32, #tpu.memory_space<vmem>>, vector<1x16x4xf32>
    %200 = vector.shape_cast %199 : vector<1x16x4xf32> to vector<16x4xf32>
    %cst_241 = arith.constant dense<0.000000e+00> : vector<16x16xf32>
    %201 = tpu.matmul %200, %195, %cst_241 {dimension_numbers = #tpu.dot_dimension_numbers<[1], [0], [0], [1], [0, 0, 1, 1], [], []>} : vector<16x4xf32>, vector<4x16xf32>, vector<16x16xf32> -> vector<16x16xf32>
    %202 = arith.addf %198, %201 : vector<16x16xf32>
    %203 = arith.addf %183, %202 : vector<16x16xf32>
    %c2_242 = arith.constant 2 : index
    %c0_243 = arith.constant 0 : index
    %c0_244 = arith.constant 0 : index
    %204 = vector.load %arg7[%c2_242, %c0_243, %c0_244] : memref<4x16x16xf32, #tpu.memory_space<vmem>>, vector<1x16x16xf32>
    %205 = vector.shape_cast %204 : vector<1x16x16xf32> to vector<16x16xf32>
    %206 = vector.shape_cast %203 : vector<16x16xf32> to vector<1x16x16xf32>
    tpu.vector_store %arg7[%c2_242, %c0_243, %c0_244], %206 {strides = array<i32>} : memref<4x16x16xf32, #tpu.memory_space<vmem>>, vector<1x16x16xf32>,
    %c0_245 = arith.constant 0 : index
    %c0_246 = arith.constant 0 : index
    %207 = vector.load %arg2[%c0_245, %c0_246] : memref<16x8xf32, #tpu.memory_space<vmem>>, vector<16x8xf32>
    %c3_247 = arith.constant 3 : index
    %c0_248 = arith.constant 0 : index
    %c0_249 = arith.constant 0 : index
    %208 = vector.load %arg1[%c3_247, %c0_248, %c0_249] : memref<4x8x8xf32, #tpu.memory_space<vmem>>, vector<1x8x8xf32>
    %209 = vector.shape_cast %208 : vector<1x8x8xf32> to vector<8x8xf32>
    %cst_250 = arith.constant dense<0.000000e+00> : vector<16x8xf32>
    %210 = tpu.matmul %207, %209, %cst_250 {dimension_numbers = #tpu.dot_dimension_numbers<[1], [0], [0], [1], [0, 0, 1, 1], [], []>} : vector<16x8xf32>, vector<8x8xf32>, vector<16x8xf32> -> vector<16x8xf32>
    %c0_251 = arith.constant 0 : index
    %c0_252 = arith.constant 0 : index
    %211 = vector.load %arg3[%c0_251, %c0_252] : memref<8x16xf32, #tpu.memory_space<vmem>>, vector<8x16xf32>
    %cst_253 = arith.constant dense<0.000000e+00> : vector<16x16xf32>
    %212 = tpu.matmul %210, %211, %cst_253 {dimension_numbers = #tpu.dot_dimension_numbers<[1], [0], [0], [1], [0, 0, 1, 1], [], []>} : vector<16x8xf32>, vector<8x16xf32>, vector<16x16xf32> -> vector<16x16xf32>
    %c3_254 = arith.constant 3 : index
    %c0_255 = arith.constant 0 : index
    %c0_256 = arith.constant 0 : index
    %c0_257 = arith.constant 0 : index
    %213 = vector.load %arg4[%c3_254, %c0_255, %c0_256, %c0_257] : memref<4x6x4x8xf32, #tpu.memory_space<vmem>>, vector<1x1x4x8xf32>
    %214 = vector.shape_cast %213 : vector<1x1x4x8xf32> to vector<4x8xf32>
    %c3_258 = arith.constant 3 : index
    %c5_259 = arith.constant 5 : index
    %c0_260 = arith.constant 0 : index
    %c0_261 = arith.constant 0 : index
    %215 = vector.load %arg4[%c3_258, %c5_259, %c0_260, %c0_261] : memref<4x6x4x8xf32, #tpu.memory_space<vmem>>, vector<1x1x4x8xf32>
    %216 = vector.shape_cast %215 : vector<1x1x4x8xf32> to vector<4x8xf32>
    %217 = arith.addf %214, %216 : vector<4x8xf32>
    %218 = arith.subf %214, %216 : vector<4x8xf32>
    %c0_262 = arith.constant 0 : index
    %c0_263 = arith.constant 0 : index
    %c0_264 = arith.constant 0 : index
    %219 = vector.load %arg6[%c0_262, %c0_263, %c0_264] : memref<4x8x16xf32, #tpu.memory_space<vmem>>, vector<1x8x16xf32>
    %220 = vector.shape_cast %219 : vector<1x8x16xf32> to vector<8x16xf32>
    %cst_265 = arith.constant dense<0.000000e+00> : vector<4x16xf32>
    %221 = tpu.matmul %217, %220, %cst_265 {dimension_numbers = #tpu.dot_dimension_numbers<[1], [0], [0], [1], [0, 0, 1, 1], [], []>} : vector<4x8xf32>, vector<8x16xf32>, vector<4x16xf32> -> vector<4x16xf32>
    %c2_266 = arith.constant 2 : index
    %c0_267 = arith.constant 0 : index
    %c0_268 = arith.constant 0 : index
    %222 = vector.load %arg6[%c2_266, %c0_267, %c0_268] : memref<4x8x16xf32, #tpu.memory_space<vmem>>, vector<1x8x16xf32>
    %223 = vector.shape_cast %222 : vector<1x8x16xf32> to vector<8x16xf32>
    %cst_269 = arith.constant dense<0.000000e+00> : vector<4x16xf32>
    %224 = tpu.matmul %218, %223, %cst_269 {dimension_numbers = #tpu.dot_dimension_numbers<[1], [0], [0], [1], [0, 0, 1, 1], [], []>} : vector<4x8xf32>, vector<8x16xf32>, vector<4x16xf32> -> vector<4x16xf32>
    %c2_270 = arith.constant 2 : index
    %c0_271 = arith.constant 0 : index
    %c0_272 = arith.constant 0 : index
    %225 = vector.load %arg5[%c2_270, %c0_271, %c0_272] : memref<4x16x4xf32, #tpu.memory_space<vmem>>, vector<1x16x4xf32>
    %226 = vector.shape_cast %225 : vector<1x16x4xf32> to vector<16x4xf32>
    %cst_273 = arith.constant dense<0.000000e+00> : vector<16x16xf32>
    %227 = tpu.matmul %226, %221, %cst_273 {dimension_numbers = #tpu.dot_dimension_numbers<[1], [0], [0], [1], [0, 0, 1, 1], [], []>} : vector<16x4xf32>, vector<4x16xf32>, vector<16x16xf32> -> vector<16x16xf32>
    %c3_274 = arith.constant 3 : index
    %c0_275 = arith.constant 0 : index
    %c0_276 = arith.constant 0 : index
    %228 = vector.load %arg5[%c3_274, %c0_275, %c0_276] : memref<4x16x4xf32, #tpu.memory_space<vmem>>, vector<1x16x4xf32>
    %229 = vector.shape_cast %228 : vector<1x16x4xf32> to vector<16x4xf32>
    %cst_277 = arith.constant dense<0.000000e+00> : vector<16x16xf32>
    %230 = tpu.matmul %229, %224, %cst_277 {dimension_numbers = #tpu.dot_dimension_numbers<[1], [0], [0], [1], [0, 0, 1, 1], [], []>} : vector<16x4xf32>, vector<4x16xf32>, vector<16x16xf32> -> vector<16x16xf32>
    %231 = arith.addf %227, %230 : vector<16x16xf32>
    %232 = arith.addf %212, %231 : vector<16x16xf32>
    %c3_278 = arith.constant 3 : index
    %c2_279 = arith.constant 2 : index
    %c0_280 = arith.constant 0 : index
    %c0_281 = arith.constant 0 : index
    %233 = vector.load %arg4[%c3_278, %c2_279, %c0_280, %c0_281] : memref<4x6x4x8xf32, #tpu.memory_space<vmem>>, vector<1x1x4x8xf32>
    %234 = vector.shape_cast %233 : vector<1x1x4x8xf32> to vector<4x8xf32>
    %c3_282 = arith.constant 3 : index
    %c3_283 = arith.constant 3 : index
    %c0_284 = arith.constant 0 : index
    %c0_285 = arith.constant 0 : index
    %235 = vector.load %arg4[%c3_282, %c3_283, %c0_284, %c0_285] : memref<4x6x4x8xf32, #tpu.memory_space<vmem>>, vector<1x1x4x8xf32>
    %236 = vector.shape_cast %235 : vector<1x1x4x8xf32> to vector<4x8xf32>
    %237 = arith.addf %234, %236 : vector<4x8xf32>
    %238 = arith.subf %234, %236 : vector<4x8xf32>
    %c1_286 = arith.constant 1 : index
    %c0_287 = arith.constant 0 : index
    %c0_288 = arith.constant 0 : index
    %239 = vector.load %arg6[%c1_286, %c0_287, %c0_288] : memref<4x8x16xf32, #tpu.memory_space<vmem>>, vector<1x8x16xf32>
    %240 = vector.shape_cast %239 : vector<1x8x16xf32> to vector<8x16xf32>
    %cst_289 = arith.constant dense<0.000000e+00> : vector<4x16xf32>
    %241 = tpu.matmul %237, %240, %cst_289 {dimension_numbers = #tpu.dot_dimension_numbers<[1], [0], [0], [1], [0, 0, 1, 1], [], []>} : vector<4x8xf32>, vector<8x16xf32>, vector<4x16xf32> -> vector<4x16xf32>
    %c3_290 = arith.constant 3 : index
    %c0_291 = arith.constant 0 : index
    %c0_292 = arith.constant 0 : index
    %242 = vector.load %arg6[%c3_290, %c0_291, %c0_292] : memref<4x8x16xf32, #tpu.memory_space<vmem>>, vector<1x8x16xf32>
    %243 = vector.shape_cast %242 : vector<1x8x16xf32> to vector<8x16xf32>
    %cst_293 = arith.constant dense<0.000000e+00> : vector<4x16xf32>
    %244 = tpu.matmul %238, %243, %cst_293 {dimension_numbers = #tpu.dot_dimension_numbers<[1], [0], [0], [1], [0, 0, 1, 1], [], []>} : vector<4x8xf32>, vector<8x16xf32>, vector<4x16xf32> -> vector<4x16xf32>
    %c0_294 = arith.constant 0 : index
    %c0_295 = arith.constant 0 : index
    %c0_296 = arith.constant 0 : index
    %245 = vector.load %arg5[%c0_294, %c0_295, %c0_296] : memref<4x16x4xf32, #tpu.memory_space<vmem>>, vector<1x16x4xf32>
    %246 = vector.shape_cast %245 : vector<1x16x4xf32> to vector<16x4xf32>
    %cst_297 = arith.constant dense<0.000000e+00> : vector<16x16xf32>
    %247 = tpu.matmul %246, %241, %cst_297 {dimension_numbers = #tpu.dot_dimension_numbers<[1], [0], [0], [1], [0, 0, 1, 1], [], []>} : vector<16x4xf32>, vector<4x16xf32>, vector<16x16xf32> -> vector<16x16xf32>
    %c1_298 = arith.constant 1 : index
    %c0_299 = arith.constant 0 : index
    %c0_300 = arith.constant 0 : index
    %248 = vector.load %arg5[%c1_298, %c0_299, %c0_300] : memref<4x16x4xf32, #tpu.memory_space<vmem>>, vector<1x16x4xf32>
    %249 = vector.shape_cast %248 : vector<1x16x4xf32> to vector<16x4xf32>
    %cst_301 = arith.constant dense<0.000000e+00> : vector<16x16xf32>
    %250 = tpu.matmul %249, %244, %cst_301 {dimension_numbers = #tpu.dot_dimension_numbers<[1], [0], [0], [1], [0, 0, 1, 1], [], []>} : vector<16x4xf32>, vector<4x16xf32>, vector<16x16xf32> -> vector<16x16xf32>
    %251 = arith.addf %247, %250 : vector<16x16xf32>
    %252 = arith.addf %232, %251 : vector<16x16xf32>
    %c3_302 = arith.constant 3 : index
    %c1_303 = arith.constant 1 : index
    %c0_304 = arith.constant 0 : index
    %c0_305 = arith.constant 0 : index
    %253 = vector.load %arg4[%c3_302, %c1_303, %c0_304, %c0_305] : memref<4x6x4x8xf32, #tpu.memory_space<vmem>>, vector<1x1x4x8xf32>
    %254 = vector.shape_cast %253 : vector<1x1x4x8xf32> to vector<4x8xf32>
    %c3_306 = arith.constant 3 : index
    %c4_307 = arith.constant 4 : index
    %c0_308 = arith.constant 0 : index
    %c0_309 = arith.constant 0 : index
    %255 = vector.load %arg4[%c3_306, %c4_307, %c0_308, %c0_309] : memref<4x6x4x8xf32, #tpu.memory_space<vmem>>, vector<1x1x4x8xf32>
    %256 = vector.shape_cast %255 : vector<1x1x4x8xf32> to vector<4x8xf32>
    %257 = arith.addf %254, %256 : vector<4x8xf32>
    %258 = arith.subf %254, %256 : vector<4x8xf32>
    %c1_310 = arith.constant 1 : index
    %c0_311 = arith.constant 0 : index
    %c0_312 = arith.constant 0 : index
    %259 = vector.load %arg6[%c1_310, %c0_311, %c0_312] : memref<4x8x16xf32, #tpu.memory_space<vmem>>, vector<1x8x16xf32>
    %260 = vector.shape_cast %259 : vector<1x8x16xf32> to vector<8x16xf32>
    %cst_313 = arith.constant dense<0.000000e+00> : vector<4x16xf32>
    %261 = tpu.matmul %257, %260, %cst_313 {dimension_numbers = #tpu.dot_dimension_numbers<[1], [0], [0], [1], [0, 0, 1, 1], [], []>} : vector<4x8xf32>, vector<8x16xf32>, vector<4x16xf32> -> vector<4x16xf32>
    %c3_314 = arith.constant 3 : index
    %c0_315 = arith.constant 0 : index
    %c0_316 = arith.constant 0 : index
    %262 = vector.load %arg6[%c3_314, %c0_315, %c0_316] : memref<4x8x16xf32, #tpu.memory_space<vmem>>, vector<1x8x16xf32>
    %263 = vector.shape_cast %262 : vector<1x8x16xf32> to vector<8x16xf32>
    %cst_317 = arith.constant dense<0.000000e+00> : vector<4x16xf32>
    %264 = tpu.matmul %258, %263, %cst_317 {dimension_numbers = #tpu.dot_dimension_numbers<[1], [0], [0], [1], [0, 0, 1, 1], [], []>} : vector<4x8xf32>, vector<8x16xf32>, vector<4x16xf32> -> vector<4x16xf32>
    %c2_318 = arith.constant 2 : index
    %c0_319 = arith.constant 0 : index
    %c0_320 = arith.constant 0 : index
    %265 = vector.load %arg5[%c2_318, %c0_319, %c0_320] : memref<4x16x4xf32, #tpu.memory_space<vmem>>, vector<1x16x4xf32>
    %266 = vector.shape_cast %265 : vector<1x16x4xf32> to vector<16x4xf32>
    %cst_321 = arith.constant dense<0.000000e+00> : vector<16x16xf32>
    %267 = tpu.matmul %266, %261, %cst_321 {dimension_numbers = #tpu.dot_dimension_numbers<[1], [0], [0], [1], [0, 0, 1, 1], [], []>} : vector<16x4xf32>, vector<4x16xf32>, vector<16x16xf32> -> vector<16x16xf32>
    %c3_322 = arith.constant 3 : index
    %c0_323 = arith.constant 0 : index
    %c0_324 = arith.constant 0 : index
    %268 = vector.load %arg5[%c3_322, %c0_323, %c0_324] : memref<4x16x4xf32, #tpu.memory_space<vmem>>, vector<1x16x4xf32>
    %269 = vector.shape_cast %268 : vector<1x16x4xf32> to vector<16x4xf32>
    %cst_325 = arith.constant dense<0.000000e+00> : vector<16x16xf32>
    %270 = tpu.matmul %269, %264, %cst_325 {dimension_numbers = #tpu.dot_dimension_numbers<[1], [0], [0], [1], [0, 0, 1, 1], [], []>} : vector<16x4xf32>, vector<4x16xf32>, vector<16x16xf32> -> vector<16x16xf32>
    %271 = arith.addf %267, %270 : vector<16x16xf32>
    %272 = arith.addf %252, %271 : vector<16x16xf32>
    %c3_326 = arith.constant 3 : index
    %c0_327 = arith.constant 0 : index
    %c0_328 = arith.constant 0 : index
    %273 = vector.load %arg7[%c3_326, %c0_327, %c0_328] : memref<4x16x16xf32, #tpu.memory_space<vmem>>, vector<1x16x16xf32>
    %274 = vector.shape_cast %273 : vector<1x16x16xf32> to vector<16x16xf32>
    %275 = vector.shape_cast %272 : vector<16x16xf32> to vector<1x16x16xf32>
    tpu.vector_store %arg7[%c3_326, %c0_327, %c0_328], %275 {strides = array<i32>} : memref<4x16x16xf32, #tpu.memory_space<vmem>>, vector<1x16x16xf32>,
    return
  }
  func.func @transform_0(%arg0: i32) -> (i32, i32, i32) {
    %c0_i32 = arith.constant 0 : i32
    %c0_i32_0 = arith.constant 0 : i32
    %c0_i32_1 = arith.constant 0 : i32
    return %arg0, %c0_i32, %c0_i32_0 : i32, i32, i32
  }
  func.func @transform_1(%arg0: i32) -> (i32, i32) {
    %c0_i32 = arith.constant 0 : i32
    %c0_i32_0 = arith.constant 0 : i32
    %c0_i32_1 = arith.constant 0 : i32
    return %c0_i32, %c0_i32_0 : i32, i32
  }
  func.func @transform_2(%arg0: i32) -> (i32, i32) {
    %c0_i32 = arith.constant 0 : i32
    %c0_i32_0 = arith.constant 0 : i32
    %c0_i32_1 = arith.constant 0 : i32
    return %c0_i32, %c0_i32_0 : i32, i32
  }
  func.func @transform_3(%arg0: i32) -> (i32, i32, i32, i32) {
    %c0_i32 = arith.constant 0 : i32
    %c0_i32_0 = arith.constant 0 : i32
    %c0_i32_1 = arith.constant 0 : i32
    %c0_i32_2 = arith.constant 0 : i32
    return %arg0, %c0_i32, %c0_i32_0, %c0_i32_1 : i32, i32, i32, i32
  }
  func.func @transform_4(%arg0: i32) -> (i32, i32, i32) {
    %c0_i32 = arith.constant 0 : i32
    %c0_i32_0 = arith.constant 0 : i32
    %c0_i32_1 = arith.constant 0 : i32
    %c0_i32_2 = arith.constant 0 : i32
    return %c0_i32, %c0_i32_0, %c0_i32_1 : i32, i32, i32
  }
  func.func @transform_5(%arg0: i32) -> (i32, i32, i32) {
    %c0_i32 = arith.constant 0 : i32
    %c0_i32_0 = arith.constant 0 : i32
    %c0_i32_1 = arith.constant 0 : i32
    %c0_i32_2 = arith.constant 0 : i32
    return %c0_i32, %c0_i32_0, %c0_i32_1 : i32, i32, i32
  }
  func.func @transform_6(%arg0: i32) -> (i32, i32, i32) {
    %c0_i32 = arith.constant 0 : i32
    %c0_i32_0 = arith.constant 0 : i32
    %c0_i32_1 = arith.constant 0 : i32
    return %arg0, %c0_i32, %c0_i32_0 : i32, i32, i32
  }
}

</mosaic_0001>

<bundles_post_ra>
// kernel: tpu_custom_call.1
= control target key start
LH: loop header
LB: loop body
LE: loop exit
PB: predicated region body
PF: predicated region fallthrough
CT: control target
= control target key end

     0   :  { %11 = vsyncpa [#allocation3], 0  ;;  %s6498_s0 = inlined_call_operand.vmem [shape: f32[8,8,8], index: 0, kind: input, shape index: {}]   ;;  %s6499_s1 = inlined_call_operand.vmem [shape: f32[16,8], index: 1, kind: input, shape index: {}]   ;;  %s6500_s2 = inlined_call_operand.hbm [shape: f32[8,16], index: 2, kind: input, shape index: {}]   ;;  %s6501_s3 = inlined_call_operand.hbm [shape: f32[8,6,4,8], index: 3, kind: input, shape index: {}]   ;;  %s6502_s4 = inlined_call_operand.vmem [shape: f32[4,16,4], index: 4, kind: input, shape index: {}]   ;;  %s6503_s5 = inlined_call_operand.vmem [shape: f32[4,8,16], index: 5, kind: input, shape index: {}]   ;;  %s6504_s6 = inlined_call_operand.hbm [shape: f32[8,16,16], index: 6, kind: output, shape index: {}]  }
   0x1   :  { %12 = vsyncpa [#allocation6], 0 }
   0x2   :  { %14 = vsyncpa [#allocation6 + $0x1], 0 }
   0x3   :  { %15 = vsyncpa [#allocation4], 0 }
   0x4   :  { %17 = vsyncpa [#allocation4 + $0x1], 0  ;;  %s5875_s21 = smov 0   ;;  %s5877_s22 = smov 0  }
   0x5   :  { %s5879_s23 = smov 0   ;;  %s5881_s24 = smov 0  }
   0x6 LB: > { %s5896_s25 = sadd.s32 4294967295, %s5829_s24   ;;  %s4963_s26 = sadd.s32 4294967294, %s5829_s24   ;;  %s5829_s24 = sphi %s5881_s24, %s6529_s24   ;;  %s5825_s23 = sphi %s5879_s23, %s6528_s23   ;;  %s5821_s22 = sphi %s5877_s22, %s6527_s22   ;;  %s5817_s21 = sphi %s5875_s21, %s6526_s21  }
   0x7   : > { %s5900_s27 = sadd.s32 1, %s5829_s24   ;;  %s98_s28 = sadd.s32 1, %s5825_s23 }
   0x8   : > { %s95_s29 = ssub.s32 %s5829_s24, %s5900_s27  ;;  %p105_p0 = scmp.ne.s32.totalorder %s5825_s23, %s5821_s22 }
   0x9   : > { %p96_p1 = scmp.eq.s32.totalorder %s95_s29, 0  ;;  %p106_p2 = scmp.eq.s32.totalorder %s5829_s24, 0 }
   0xa   : > { %p111_p3 = scmp.ne.s32.totalorder %s5821_s22, %s5817_s21  ;;  %p6505_p4 = scmp.eq.s32.totalorder %s5896_s25, 0 }
   0xb   : > { %s5912_s30 = scalar_select %p96_p1, %s5825_s23, %s98_s28  }
   0xc   : > { %p5914_p5 = por %p106_p2, %p105_p0  ;;  %p5920_p6 = por %p6505_p4, %p111_p3 }
   0xd   : > { %p177_p7 = scmp.eq.s32.totalorder %s5896_s25, 1  ;;  %p183_p8 = scmp.eq.s32.totalorder %s4963_s26, 1 }
   0xe   : > { %s6511_s8 = scalar_select %p5920_p6, 1, 0 }
   0xf   : > { %p4964_p9 = scmp.ge.s32.totalorder %s5829_s24, 1  ;;  %p190_p10 = scmp.lt.s32.totalorder %s5829_s24, 3 }
  0x10   : > { %p5927_p11 = por %p177_p7, %p105_p0  ;;  %p5931_p12 = por %p183_p8, %p111_p3 }
  0x11   : > { %p5935_p13 = pnand %p4964_p9, %p190_p10  ;;  %s5831_s12 = smov [#allocation2]  }
  0x12   : > { %s6512_s9 = scalar_select %p5927_p11, 1, 0 }
  0x13   : > { %s6513_s10 = scalar_select %p5931_p12, 1, 0 }
  0x14   : > { %s6514_s11 = scalar_select %p5935_p13, 1, 0 }
  0x15   : > { %p5646_p2 = pneg %p5935_p13  ;;  %s206_s13 = sshll.u32 %s5831_s12, 4  ;;  %s207_s13 = int_to_ptr.vmem [resolvable:$true] %s206_s13 }
  0x16   : > { %p5659_p4 = scmp.lt.s32.totalorder %s5829_s24, 2  ;;  %p6515_p0 = scmp.eq.s32.totalorder %s5896_s25, 0 }
  0x17   : > { %s232_s15 = sand.u32 1, %s5825_s23   ;;  %s5701_s20 = scalar_lea.hbm %s6500_s2, 128 }
  0x18   : > { %p5945_p7 = pnand %p5646_p2, %p6515_p0  ;;  %p5952_p3 = pnand %p5659_p4, %p5914_p5 }
  0x19   : > { %s5635_s17 = smul.u32 96, %s232_s15  ;;  %p5702_p8 = scmp.ne.s32.totalorder %s6500_s2, %s5701_s20 }
  0x1a   : > { %s6517_s16 = scalar_select %p5952_p3, 1, 0 }
  0x1b   : > { %p5703_p9 = pneg %p5945_p7  ;;  %p5708_p4 = scmp.lt.u32.totalorder %s5701_s20, %s6500_s2 }
  0x1d   : > { %p5704_p10 = pnand %p5703_p9, %p5702_p8 }
  0x1f   : > { %p5705_p2 = pneg %p5704_p10 }
  0x21   : > { %p5710_p5 = pnand %p5708_p4, %p5705_p2 }
  0x23   : > { %5713 = shalt.err (!%p5710_p5)
}
  0x24   : > { %s5714_s7 = scalar_lea.vmem %s207_s13, 128  ;;  %p5722_p11 = scmp.lt.s32.totalorder %s207_s13, %s207_s13 }
  0x25   : > { %p5715_p0 = scmp.ne.s32.totalorder %s207_s13, %s5714_s7  ;;  %p5723_p6 = scmp.lt.s32.totalorder %s5714_s7, %s5714_s7 }
  0x27   : > { %p5717_p1 = pnand %p5715_p0, %p5703_p9  ;;  %p5724_p13 = por %p5723_p6, %p5722_p11 }
  0x29   : > { %p5718_p12 = pneg %p5717_p1 }
  0x2b   : > { %p5725_p3 = pnand %p5724_p13, %p5718_p12 }
  0x2d   : > { %5728 = shalt.err (!%p5725_p3)
}
  0x2e   : > { %5649 = dma.hbm_to_vmem [thread:$0]  (!%p5945_p7), %s6500_s2, 128, %s207_s13, [#allocation3]  }
  0x2f   : > { %s5636_s20 = smul.u32 1536, %s5829_s24  ;;  %s236_s26 = scalar_lea.vmem [#allocation5], %s5635_s17 }
  0x30   : > { %s244_s28 = sshll.u32 %s236_s26, 4  ;;  %s5980_s14 = scalar_lea.sflag [#allocation6], %s232_s15  ;;  %s5973_s28 = int_to_ptr.vmem [resolvable:$true] %s244_s28 }
  0x31   : > { %s5978_s7 = scalar_lea.hbm %s6501_s3, %s5636_s20  ;;  %p6518_p11 = scmp.ne.s32.totalorder %s6517_s16, 0 }
  0x32   : > { %s5729_s18 = scalar_lea.hbm %s5978_s7, 1536  ;;  %s5734_s19 = scalar_lea.hbm %s6501_s3, 3072 }
  0x33   : > { %p5730_p6 = scmp.ne.s32.totalorder %s5978_s7, %s5729_s18  ;;  %p5731_p12 = pneg %p6518_p11 }
  0x34   : > { %p5735_p7 = scmp.lt.u32.totalorder %s5978_s7, %s6501_s3  ;;  %p5736_p3 = scmp.lt.u32.totalorder %s5734_s19, %s5729_s18 }
  0x35   : > { %p5732_p13 = pnand %p5731_p12, %p5730_p6  ;;  %p5738_p9 = scmp.lt.u32.totalorder %s5729_s18, %s5978_s7 }
  0x36   : > { %p5737_p8 = por %p5736_p3, %p5735_p7 }
  0x37   : > { %p5733_p1 = pneg %p5732_p13 }
  0x38   : > { %p5739_p10 = por %p5738_p9, %p5737_p8 }
  0x3a   : > { %p5740_p2 = pnand %p5739_p10, %p5733_p1 }
  0x3c   : > { %5743 = shalt.err (!%p5740_p2)
}
  0x3d   : > { %s5744_s15 = scalar_lea.vmem %s5973_s28, 1536  ;;  %s5832_s29 = smov [#allocation5]  }
  0x3e   : > { %p5745_p4 = scmp.ne.s32.totalorder %s5973_s28, %s5744_s15  ;;  %s5749_s12 = sshll.u32 %s5832_s29, 4  ;;  %s5750_s12 = int_to_ptr.vmem [resolvable:$false] %s5749_s12 }
  0x3f   : > { %s5751_s13 = scalar_lea.vmem %s5750_s12, 3072  ;;  %p5752_p6 = scmp.lt.s32.totalorder %s5973_s28, %s5750_s12 }
  0x40   : > { %p5747_p5 = pnand %p5745_p4, %p5731_p12  ;;  %p5753_p13 = scmp.lt.s32.totalorder %s5751_s13, %s5744_s15 }
  0x42   : > { %p5748_p0 = pneg %p5747_p5  ;;  %p5754_p7 = por %p5753_p13, %p5752_p6 }
  0x44   : > { %p5755_p3 = pnand %p5754_p7, %p5748_p0 }
  0x46   : > { %5758 = shalt.err (!%p5755_p3)
}
  0x47   : > { %s5833_s18 = smov 64   ;;  %s5834_s17 = smov 4  }
  0x48   : > { %5653 = dma.hbm_to_vmem [thread:$0]  (!%p6518_p11), %s5978_s7, 1536, %s5973_s28, %s5980_s14, %s5833_s18, %s5833_s18, %s5834_s17  }
  0x49   : > { %p6519_p12 = scmp.ne.s32.totalorder %s6514_s11, 0 }
  0x4a   : > { %p6520_p1 = scmp.eq.s32.totalorder (!%p6519_p12), %s5896_s25, 0 }
  0x4b   : > { %256 = sbr.rel (%p6519_p12) target bundleno = 751 (0x2ef), region = 44 }
  0x52   : > { %5804 = dma.done.wait (%p6520_p1), [#allocation3], 128   ;;  %p6521_p8 = pmov %p6520_p1 }
  0x53   : > { %s6015_s19 = sand.u32 1, %s5821_s22   ;;  %p6522_p11 = scmp.ne.s32.totalorder %s6511_s8, 0 }
  0x54   : > { %5806 = vsyncadd (%p6521_p8), [#allocation3], 4294967168  ;;  %s5637_s20 = smul.u32 96, %s6015_s19  ;;  %s263_s26 = scalar_lea.sflag [#allocation6], %s6015_s19 }
  0x56   : > { %s6019_s15 = scalar_lea.vmem [#allocation5], %s5637_s20 }
  0x57   : > { %5808 = dma.done.wait (%p6522_p11), %s263_s26, 1536  }
  0x58   : > { %5810 = vsyncadd (%p6522_p11), %s263_s26, 4294965760  ;;  %s4973_s11 = sshll.u32 %s5896_s25, 2  ;;  %vm311_vm0 = vcmask 64512   ;;  %v6035_v1 = vld [vmem:[%s6499_s1] sm:$0xff]  ;;  %v6040_v2 = vld [vmem:[%s6499_s1 + $0x8] sm:$0xff]  ;;  %v5835_v6 = vmov 0.0  }
  0x59   : > { %p301_p9 = scmp.lt.s32.totalorder %s4973_s11, 7  ;;  %5309 = vmatprep.mubr.msk.f32.mxu0 %vm311_vm0, %v6035_v1  ;;  %v6047_v3 = vld [vmem:[%s6503_s5] sm:$0xff]  ;;  %v394_v4 = vld [vmem:[%s6019_s15] sm:$0xf]  ;;  %v4977_v5 = vld [vmem:[%s6019_s15 + $0x14] sm:$0xf] }
  0x5a   : > { %v397_v7 = vadd.f32 %v4977_v5, %v394_v4  ;;  %vm5836_vm1 = vmmov 0   ;;  %v6061_v8 = vld [vmem:[%s6503_s5 + $0x10] sm:$0xff]  ;;  %v398_v9 = vsub.f32 %v394_v4, %v4977_v5  ;;  %v6073_v12 = vld [vmem:[%s6503_s5 + $0x8] sm:$0xff]  ;;  %v6083_v14 = vld [vmem:[%s6503_s5 + $0x18] sm:$0xff]  ;;  %vm554_vm2 = vcmask 31744   ;;  %s5162_s13 = sshll.u32 %s5896_s25, 10 }
  0x5b   : > { %s6531_s11 = smov (!%p301_p9, %s4973_s11), 7  ;;  %v4993_v10 = vld [vmem:[%s6019_s15 + $0x8] sm:$0xf]  ;;  %v4994_v11 = vld [vmem:[%s6019_s15 + $0xc] sm:$0xf]  ;;  %vm561_vm3 = vcmask 1043456   ;;  %s6452_s20 = scalar_lea.hbm %s6504_s6, %s5162_s13 }
  0x5c   : > { %s4974_s16 = sshll.u32 %s6531_s11, 3  ;;  %v809_v13 = vadd.f32 %v4994_v11, %v4993_v10  ;;  %v810_v15 = vsub.f32 %v4993_v10, %v4994_v11  ;;  %v5007_v16 = vld [vmem:[%s6019_s15 + $0x4] sm:$0xf]  ;;  %v5008_v17 = vld [vmem:[%s6019_s15 + $0x10] sm:$0xf]  ;;  %v6207_v54 = vld [vmem:[%s6502_s4 + $0x30] sm:$0xff] }
  0x5d   : > { %s6029_s14 = scalar_lea.vmem %s6498_s0, %s4974_s16  ;;  %v1140_v18 = vadd.f32 %v5008_v17, %v5007_v16  ;;  %v1141_v20 = vsub.f32 %v5007_v16, %v5008_v17  ;;  %v5020_v21 = vld [vmem:[%s6019_s15 + $0x18] sm:$0xf]  ;;  %v5021_v22 = vld [vmem:[%s6019_s15 + $0x2c] sm:$0xf]  ;;  %v5037_v25 = vld [vmem:[%s6019_s15 + $0x20] sm:$0xf]  ;;  %5324 = vmatprep.mubr.msk.f32.mxu1 %vm554_vm2, %v6207_v54 }
  0x5e   : > { %v310_v0 = vld [vmem:[%s6029_s14] sm:$0xff]  ;;  %v5017_v19 = vld [vmem:[%s6029_s14 + $0x8] sm:$0xff]  ;;  %v1539_v23 = vadd.f32 %v5021_v22, %v5020_v21  ;;  %v1540_v24 = vsub.f32 %v5020_v21, %v5021_v22  ;;  %v5052_v30 = vld [vmem:[%s6019_s15 + $0x28] sm:$0xf]  ;;  %vm1446_vm4 = vcmask 130048   ;;  %s4852_s26 = scalar_lea.sflag [#allocation4], %s6015_s19 }
  0x5f   : > { %5307 = vmatprep.subr.mxu0 %v310_v0  ;;  %v5038_v26 = vld [vmem:[%s6019_s15 + $0x24] sm:$0xf]  ;;  %v5051_v29 = vld [vmem:[%s6019_s15 + $0x1c] sm:$0xf]  ;;  %v5063_v32 = vld [vmem:[%s6029_s14 + $0x10] sm:$0xff]  ;;  %p6523_p2 = scmp.ne.s32.totalorder %s6512_s9, 0 }
  0x60   : > { %5308 = vmatpush3.msra.mxu0 %v310_v0  ;;  %v1946_v27 = vadd.f32 %v5038_v26, %v5037_v25  ;;  %v1947_v28 = vsub.f32 %v5037_v25, %v5038_v26  ;;  %v2274_v31 = vadd.f32 %v5052_v30, %v5051_v29  ;;  %v2275_v33 = vsub.f32 %v5051_v29, %v5052_v30  ;;  %v5066_v34 = vld [vmem:[%s6019_s15 + $0x30] sm:$0xf]  ;;  %v5067_v35 = vld [vmem:[%s6019_s15 + $0x44] sm:$0xf]  ;;  %v5083_v38 = vld [vmem:[%s6019_s15 + $0x38] sm:$0xf] }
  0x61   : > { %5310 = vmatmul.mubr.msk.f32.vlgmr.msra.gmra.mrb[0].mxu0 %vm311_vm0, %v6040_v2  ;;  %5312 = vmatprep.subr.mxu0 %v5835_v6  ;;  %v2673_v36 = vadd.f32 %v5067_v35, %v5066_v34  ;;  %v2674_v37 = vsub.f32 %v5066_v34, %v5067_v35  ;;  %v5084_v39 = vld [vmem:[%s6019_s15 + $0x3c] sm:$0xf]  ;;  %v5097_v42 = vld [vmem:[%s6019_s15 + $0x34] sm:$0xf]  ;;  %v5098_v43 = vld [vmem:[%s6019_s15 + $0x40] sm:$0xf] }
  0x62   : > { %5313 = vmatpush3.msra.mxu0 %v6047_v3  ;;  %5314 = vmatprep.mubr.msk.f32.mxu0 %vm5836_vm1, %v5835_v6  ;;  %v3080_v40 = vadd.f32 %v5084_v39, %v5083_v38  ;;  %v3081_v41 = vsub.f32 %v5083_v38, %v5084_v39  ;;  %v3408_v44 = vadd.f32 %v5098_v43, %v5097_v42  ;;  %v5109_v45 = vld [vmem:[%s6029_s14 + $0x18] sm:$0xff]  ;;  %v5112_v47 = vld [vmem:[%s6019_s15 + $0x48] sm:$0xf]  ;;  %v5113_v48 = vld [vmem:[%s6019_s15 + $0x5c] sm:$0xf]  ;;  %s5837_s25 = smov [#allocation7]  }
  0x63   : > { %5317 = vmatprep.subr.mxu0 %v5835_v6  ;;  %v3409_v46 = vsub.f32 %v5097_v42, %v5098_v43  ;;  %v3807_v49 = vadd.f32 %v5113_v48, %v5112_v47  ;;  %v3808_v50 = vsub.f32 %v5112_v47, %v5113_v48  ;;  %v5129_v51 = vld [vmem:[%s6019_s15 + $0x50] sm:$0xf]  ;;  %v5130_v52 = vld [vmem:[%s6019_s15 + $0x54] sm:$0xf]  ;;  %v5143_v56 = vld [vmem:[%s6019_s15 + $0x4c] sm:$0xf] }
  0x64   : > { %v4214_v53 = vadd.f32 %v5130_v52, %v5129_v51  ;;  %v4215_v55 = vsub.f32 %v5129_v51, %v5130_v52  ;;  %v5144_v57 = vld [vmem:[%s6019_s15 + $0x58] sm:$0xf]  ;;  %v6276_v17 = vld [vmem:[%s6502_s4 + $0x18] sm:$0xff]  ;;  %s4972_s15 = sshll.u32 %s6015_s19, 6  ;;  %s5763_s16 = sshll.u32 %s5837_s25, 4  ;;  %s5764_s16 = int_to_ptr.vmem [resolvable:$false] %s5763_s16 }
  0x65   : > { %5315 = vmatmul.mubr.msk.f32.vlgmr.msra.gmra.mrb[2].mxu0 %vm311_vm0, %v397_v7  ;;  %v4542_v58 = vadd.f32 %v5144_v57, %v5143_v56  ;;  %v4543_v59 = vsub.f32 %v5143_v56, %v5144_v57  ;;  %v6244_v4 = vld [vmem:[#allocation2] sm:$0xff]  ;;  %v6256_v7 = vld [vmem:[%s6502_s4 + $0x28] sm:$0xff]  ;;  %s299_s12 = scalar_lea.vmem [#allocation7], %s4972_s15  ;;  %s5765_s28 = scalar_lea.vmem %s5764_s16, 2048 }
  0x66   : > { %5318 = vmatpush3.msra.mxu0 %v6061_v8  ;;  %5319 = vmatprep.mubr.msk.f32.mxu0 %vm5836_vm1, %v5835_v6  ;;  %s4866_s8 = sshll.u32 %s299_s12, 4  ;;  %s6447_s8 = int_to_ptr.vmem [resolvable:$true] %s4866_s8 }
  0x67   : > { %5337 = vmatprep.subr.mxu0 %v5835_v6  ;;  %s5759_s11 = scalar_lea.vmem %s6447_s8, 1024  ;;  %p5766_p0 = scmp.lt.s32.totalorder %s6447_s8, %s5764_s16 }
  0x68   : > { %p5760_p10 = scmp.ne.s32.totalorder %s6447_s8, %s5759_s11  ;;  %p5767_p6 = scmp.lt.s32.totalorder %s5765_s28, %s5759_s11 }
  0x69   : > { %5320 = vmatmul.mubr.msk.f32.vlgmr.msra.gmra.mrb[4].mxu0 %vm311_vm0, %v398_v9 }
  0x6a   : > { %5338 = vmatpush3.msra.mxu0 %v6073_v12  ;;  %5339 = vmatprep.mubr.msk.f32.mxu0 %vm5836_vm1, %v5835_v6  ;;  %p5761_p4 = pnand %p5760_p10, %p6523_p2  ;;  %p5768_p13 = por %p5767_p6, %p5766_p0 }
  0x6b   : > { %5342 = vmatprep.subr.mxu0 %v5835_v6 }
  0x6c   : > { %p5762_p5 = pneg %p5761_p4 }
  0x6d   : > { %5340 = vmatmul.mubr.msk.f32.vlgmr.msra.gmra.mrb[6].mxu0 %vm311_vm0, %v809_v13  ;;  %v6266_v13 = vld [vmem:[%s6502_s4 + $0x10] sm:$0xff] }
  0x6e   : > { %5343 = vmatpush3.msra.mxu0 %v6083_v14  ;;  %5344 = vmatprep.mubr.msk.f32.mxu0 %vm5836_vm1, %v5835_v6  ;;  %p5769_p7 = pnand %p5768_p13, %p5762_p5 }
  0x6f   : > { %5357 = vmatprep.subr.mxu0 %v5835_v6 }
  0x71   : > { %5345 = vmatmul.mubr.msk.f32.vlgmr.msra.gmra.mrb[8].mxu0 %vm311_vm0, %v810_v15 }
  0x72   : > { %5358 = vmatpush3.msra.mxu0 %v6073_v12  ;;  %5359 = vmatprep.mubr.msk.f32.mxu0 %vm5836_vm1, %v5835_v6 }
  0x73   : > { %5362 = vmatprep.subr.mxu0 %v5835_v6 }
  0x75   : > { %5360 = vmatmul.mubr.msk.f32.vlgmr.msra.gmra.mrb[10].mxu0 %vm311_vm0, %v1140_v18 }
  0x76   : > { %5363 = vmatpush3.msra.mxu0 %v6083_v14  ;;  %5364 = vmatprep.mubr.msk.f32.mxu0 %vm5836_vm1, %v5835_v6 }
  0x77   : > { %5377 = vmatprep.subr.mxu0 %v5017_v19 }
  0x79   : > { %5365 = vmatmul.mubr.msk.f32.vlgmr.msra.gmra.mrb[12].mxu0 %vm311_vm0, %v1141_v20 }
  0x7a   : > { %5378 = vmatpush3.msra.mxu0 %v5017_v19  ;;  %5379 = vmatprep.mubr.msk.f32.mxu0 %vm311_vm0, %v6035_v1  ;;  %v6281_v19 = vld [vmem:[%s6502_s4] sm:$0xff] }
  0x7b   : > { %5382 = vmatprep.subr.mxu0 %v5835_v6 }
  0x7d   : > { %5380 = vmatmul.mubr.msk.f32.vlgmr.msra.gmra.mrb[14].mxu0 %vm311_vm0, %v6040_v2 }
  0x7e   : > { %5383 = vmatpush3.msra.mxu0 %v6047_v3  ;;  %5384 = vmatprep.mubr.msk.f32.mxu0 %vm5836_vm1, %v5835_v6 }
  0x7f   : > { %5387 = vmatprep.subr.mxu0 %v5835_v6 }
  0x81   : > { %5385 = vmatmul.mubr.msk.f32.vlgmr.msra.gmra.mrb[16].mxu0 %vm311_vm0, %v1539_v23  ;;  %v6292_v23 = vld [vmem:[%s6502_s4 + $0x8] sm:$0xff] }
  0x82   : > { %5388 = vmatpush3.msra.mxu0 %v6061_v8  ;;  %5389 = vmatprep.mubr.msk.f32.mxu0 %vm5836_vm1, %v5835_v6 }
  0x83   : > { %5407 = vmatprep.subr.mxu0 %v5835_v6 }
  0x85   : > { %5390 = vmatmul.mubr.msk.f32.vlgmr.msra.gmra.mrb[18].mxu0 %vm311_vm0, %v1540_v24 }
  0x86   : > { %5408 = vmatpush3.msra.mxu0 %v6073_v12  ;;  %5409 = vmatprep.mubr.msk.f32.mxu0 %vm5836_vm1, %v5835_v6 }
  0x87   : > { %5412 = vmatprep.subr.mxu0 %v5835_v6 }
  0x89   : > { %5410 = vmatmul.mubr.msk.f32.vlgmr.msra.gmra.mrb[20].mxu0 %vm311_vm0, %v1946_v27 }
  0x8a   : > { %5413 = vmatpush3.msra.mxu0 %v6083_v14  ;;  %5414 = vmatprep.mubr.msk.f32.mxu0 %vm5836_vm1, %v5835_v6 }
  0x8b   : > { %5427 = vmatprep.subr.mxu0 %v5835_v6 }
  0x8d   : > { %5415 = vmatmul.mubr.msk.f32.vlgmr.msra.gmra.mrb[22].mxu0 %vm311_vm0, %v1947_v28 }
  0x8e   : > { %5428 = vmatpush3.msra.mxu0 %v6073_v12  ;;  %5429 = vmatprep.mubr.msk.f32.mxu0 %vm5836_vm1, %v5835_v6 }
  0x8f   : > { %5432 = vmatprep.subr.mxu0 %v5835_v6 }
  0x91   : > { %5430 = vmatmul.mubr.msk.f32.vlgmr.msra.gmra.mrb[24].mxu0 %vm311_vm0, %v2274_v31 }
  0x92   : > { %5433 = vmatpush3.msra.mxu0 %v6083_v14  ;;  %5434 = vmatprep.mubr.msk.f32.mxu0 %vm5836_vm1, %v5835_v6 }
  0x93   : > { %5447 = vmatprep.subr.mxu0 %v5063_v32 }
  0x95   : > { %5435 = vmatmul.mubr.msk.f32.vlgmr.msra.gmra.mrb[26].mxu0 %vm311_vm0, %v2275_v33 }
  0x96   : > { %5448 = vmatpush3.msra.mxu0 %v5063_v32  ;;  %5449 = vmatprep.mubr.msk.f32.mxu0 %vm311_vm0, %v6035_v1 }
  0x97   : > { %5452 = vmatprep.subr.mxu0 %v5835_v6 }
  0x99   : > { %5450 = vmatmul.mubr.msk.f32.vlgmr.msra.gmra.mrb[28].mxu0 %vm311_vm0, %v6040_v2 }
  0x9a   : > { %5453 = vmatpush3.msra.mxu0 %v6047_v3  ;;  %5454 = vmatprep.mubr.msk.f32.mxu0 %vm5836_vm1, %v5835_v6 }
  0x9b   : > { %5457 = vmatprep.subr.mxu0 %v5835_v6 }
  0x9d   : > { %5455 = vmatmul.mubr.msk.f32.vlgmr.msra.gmra.mrb[30].mxu0 %vm311_vm0, %v2673_v36 }
  0x9e   : > { %5458 = vmatpush3.msra.mxu0 %v6061_v8  ;;  %5459 = vmatprep.mubr.msk.f32.mxu0 %vm5836_vm1, %v5835_v6 }
  0x9f   : > { %5477 = vmatprep.subr.mxu0 %v5835_v6 }
  0xa1   : > { %5460 = vmatmul.mubr.msk.f32.vlgmr.msra.gmra.mrb[32].mxu0 %vm311_vm0, %v2674_v37 }
  0xa2   : > { %5478 = vmatpush3.msra.mxu0 %v6073_v12  ;;  %5479 = vmatprep.mubr.msk.f32.mxu0 %vm5836_vm1, %v5835_v6 }
  0xa3   : > { %5482 = vmatprep.subr.mxu0 %v5835_v6 }
  0xa5   : > { %5480 = vmatmul.mubr.msk.f32.vlgmr.msra.gmra.mrb[34].mxu0 %vm311_vm0, %v3080_v40 }
  0xa6   : > { %5483 = vmatpush3.msra.mxu0 %v6083_v14  ;;  %5484 = vmatprep.mubr.msk.f32.mxu0 %vm5836_vm1, %v5835_v6 }
  0xa7   : > { %5497 = vmatprep.subr.mxu0 %v5835_v6 }
  0xa9   : > { %5485 = vmatmul.mubr.msk.f32.vlgmr.msra.gmra.mrb[36].mxu0 %vm311_vm0, %v3081_v41 }
  0xaa   : > { %5498 = vmatpush3.msra.mxu0 %v6073_v12  ;;  %5499 = vmatprep.mubr.msk.f32.mxu0 %vm5836_vm1, %v5835_v6 }
  0xab   : > { %5502 = vmatprep.subr.mxu0 %v5835_v6 }
  0xad   : > { %5500 = vmatmul.mubr.msk.f32.vlgmr.msra.gmra.mrb[38].mxu0 %vm311_vm0, %v3408_v44 }
  0xae   : > { %5503 = vmatpush3.msra.mxu0 %v6083_v14  ;;  %5504 = vmatprep.mubr.msk.f32.mxu0 %vm5836_vm1, %v5835_v6 }
  0xaf   : > { %5517 = vmatprep.subr.mxu0 %v5109_v45 }
  0xb1   : > { %5505 = vmatmul.mubr.msk.f32.vlgmr.msra.gmra.mrb[40].mxu0 %vm311_vm0, %v3409_v46 }
  0xb2   : > { %5518 = vmatpush3.msra.mxu0 %v5109_v45  ;;  %5519 = vmatprep.mubr.msk.f32.mxu0 %vm311_vm0, %v6035_v1  ;;  %v6235_v1 = vld [vmem:[%s6502_s4 + $0x38] sm:$0xff] }
  0xb3   : > { %5522 = vmatprep.subr.mxu0 %v5835_v6 }
  0xb5   : > { %5520 = vmatmul.mubr.msk.f32.vlgmr.msra.gmra.mrb[42].mxu0 %vm311_vm0, %v6040_v2 }
  0xb6   : > { %5523 = vmatpush3.msra.mxu0 %v6047_v3  ;;  %5524 = vmatprep.mubr.msk.f32.mxu0 %vm5836_vm1, %v5835_v6  ;;  %v6241_v3 = vld [vmem:[%s6502_s4 + $0x20] sm:$0xff] }
  0xb7   : > { %5527 = vmatprep.subr.mxu0 %v5835_v6 }
  0xb9   : > { %5525 = vmatmul.mubr.msk.f32.vlgmr.msra.gmra.mrb[44].mxu0 %vm311_vm0, %v3807_v49 }
  0xba   : > { %5528 = vmatpush3.msra.mxu0 %v6061_v8  ;;  %5529 = vmatprep.mubr.msk.f32.mxu0 %vm5836_vm1, %v5835_v6 }
  0xbb   : > { %5547 = vmatprep.subr.mxu0 %v5835_v6 }
  0xbd   : > { %5530 = vmatmul.mubr.msk.f32.vlgmr.msra.gmra.mrb[46].mxu0 %vm311_vm0, %v3808_v50 }
  0xbe   : > { %5548 = vmatpush3.msra.mxu0 %v6073_v12  ;;  %5549 = vmatprep.mubr.msk.f32.mxu0 %vm5836_vm1, %v5835_v6 }
  0xbf   : > { %5552 = vmatprep.subr.mxu0 %v5835_v6 }
  0xc1   : > { %5550 = vmatmul.mubr.msk.f32.vlgmr.msra.gmra.mrb[48].mxu0 %vm311_vm0, %v4214_v53 }
  0xc2   : > { %5553 = vmatpush3.msra.mxu0 %v6083_v14  ;;  %5554 = vmatprep.mubr.msk.f32.mxu0 %vm5836_vm1, %v5835_v6 }
  0xc3   : > { %5567 = vmatprep.subr.mxu0 %v5835_v6 }
  0xc5   : > { %5555 = vmatmul.mubr.msk.f32.vlgmr.msra.gmra.mrb[50].mxu0 %vm311_vm0, %v4215_v55 }
  0xc6   : > { %5568 = vmatpush3.msra.mxu0 %v6073_v12  ;;  %5569 = vmatprep.mubr.msk.f32.mxu0 %vm5836_vm1, %v5835_v6 }
  0xc7   : > { %5572 = vmatprep.subr.mxu0 %v5835_v6 }
  0xc9   : > { %5570 = vmatmul.mubr.msk.f32.vlgmr.msra.gmra.mrb[52].mxu0 %vm311_vm0, %v4542_v58 }
  0xca   : > { %5573 = vmatpush3.msra.mxu0 %v6083_v14  ;;  %5574 = vmatprep.mubr.msk.f32.mxu0 %vm5836_vm1, %v5835_v6 }
  0xcd   : > { %5575 = vmatmul.mubr.msk.f32.vlgmr.msra.gmra.mrb[54].mxu0 %vm311_vm0, %v4543_v59 }
 0x134   : > { %v5311_v60 = vpop.f32.mrb[0].mxu0 }
 0x135   : > { %v384_v61 = vpop.f32.mrb[1].mxu0 }
 0x138   : > { %v469_v62 = vpop.f32.mrb[2].mxu0 }
 0x139   : > { %v5316_v63 = vpop.f32.mrb[3].mxu0 }
 0x13c   : > { %v544_v0 = vpop.f32.mrb[4].mxu0 }
 0x13d   : > { %v5321_v2 = vpop.f32.mrb[5].mxu0  ;;  %5322 = vmatprep.subr.msk.mxu1 %vm561_vm3, %v544_v0 }
 0x13e   : > { %5323 = vmatpush3.msk.msra.mxu1 %vm561_vm3, %v544_v0 }
 0x13f   : > { %5325 = vmatmul.mubr.msk.f32.vlgmr.msra.gmra.mrb[0].mxu1 %vm554_vm2, %v6235_v1  ;;  %5327 = vmatprep.subr.msk.mxu1 %vm561_vm3, %v469_v62 }
 0x140   : > { %5328 = vmatpush3.msk.msra.mxu1 %vm561_vm3, %v469_v62  ;;  %5329 = vmatprep.mubr.msk.f32.mxu1 %vm554_vm2, %v6241_v3  ;;  %v882_v5 = vpop.f32.mrb[6].mxu0 }
 0x141   : > { %5332 = vmatprep.subr.mxu1 %v6244_v4  ;;  %v5341_v6 = vpop.f32.mrb[7].mxu0 }
 0x144   : > { %v957_v8 = vpop.f32.mrb[8].mxu0 }
 0x145   : > { %v5346_v9 = vpop.f32.mrb[9].mxu0 }
 0x147   : > { %5330 = vmatmul.mubr.msk.f32.vlgmr.msra.gmra.mrb[0].mxu1 %vm554_vm2, %v6256_v7 }
 0x148   : > { %5333 = vmatpush3.msra.mxu1 %v6244_v4  ;;  %5334 = vmatprep.mubr.msk.f32.mxu1 %vm311_vm0, %v384_v61  ;;  %v1211_v10 = vpop.f32.mrb[10].mxu0 }
 0x149   : > { %5347 = vmatprep.subr.msk.mxu1 %vm561_vm3, %v957_v8  ;;  %v5361_v11 = vpop.f32.mrb[11].mxu0 }
 0x14c   : > { %v1284_v12 = vpop.f32.mrb[12].mxu0 }
 0x14d   : > { %v5366_v14 = vpop.f32.mrb[13].mxu0 }
 0x14f   : > { %5335 = vmatmul.mubr.msk.f32.vlgmr.msra.gmra.mrb[0].mxu1 %vm311_vm0, %v5311_v60 }
 0x150   : > { %5348 = vmatpush3.msk.msra.mxu1 %vm561_vm3, %v957_v8  ;;  %5349 = vmatprep.mubr.msk.f32.mxu1 %vm554_vm2, %v6266_v13  ;;  %v5381_v15 = vpop.f32.mrb[14].mxu0 }
 0x151   : > { %5352 = vmatprep.subr.msk.mxu1 %vm561_vm3, %v882_v5  ;;  %v1525_v16 = vpop.f32.mrb[15].mxu0 }
 0x154   : > { %v1611_v18 = vpop.f32.mrb[16].mxu0 }
 0x155   : > { %v5386_v20 = vpop.f32.mrb[17].mxu0 }
 0x157   : > { %5350 = vmatmul.mubr.msk.f32.vlgmr.msra.gmra.mrb[0].mxu1 %vm554_vm2, %v6276_v17 }
 0x158   : > { %5353 = vmatpush3.msk.msra.mxu1 %vm561_vm3, %v882_v5  ;;  %5354 = vmatprep.mubr.msk.f32.mxu1 %vm554_vm2, %v6281_v19  ;;  %v1685_v21 = vpop.f32.mrb[18].mxu0 }
 0x159   : > { %5367 = vmatprep.subr.msk.mxu1 %vm561_vm3, %v1284_v12  ;;  %v5391_v22 = vpop.f32.mrb[19].mxu0 }
 0x15c   : > { %v2018_v24 = vpop.f32.mrb[20].mxu0 }
 0x15d   : > { %v5411_v25 = vpop.f32.mrb[21].mxu0 }
 0x15f   : > { %5355 = vmatmul.mubr.msk.f32.vlgmr.msra.gmra.mrb[0].mxu1 %vm554_vm2, %v6292_v23 }
 0x160   : > { %5368 = vmatpush3.msk.msra.mxu1 %vm561_vm3, %v1284_v12  ;;  %5369 = vmatprep.mubr.msk.f32.mxu1 %vm554_vm2, %v6207_v54  ;;  %v2092_v26 = vpop.f32.mrb[22].mxu0 }
 0x161   : > { %5372 = vmatprep.subr.msk.mxu1 %vm561_vm3, %v1211_v10  ;;  %v5416_v27 = vpop.f32.mrb[23].mxu0 }
 0x164   : > { %v2345_v28 = vpop.f32.mrb[24].mxu0 }
 0x165   : > { %v5431_v29 = vpop.f32.mrb[25].mxu0 }
 0x167   : > { %5370 = vmatmul.mubr.msk.f32.vlgmr.msra.gmra.mrb[0].mxu1 %vm554_vm2, %v6235_v1 }
 0x168   : > { %5373 = vmatpush3.msk.msra.mxu1 %vm561_vm3, %v1211_v10  ;;  %5374 = vmatprep.mubr.msk.f32.mxu1 %vm554_vm2, %v6241_v3  ;;  %v2418_v30 = vpop.f32.mrb[26].mxu0 }
 0x169   : > { %5392 = vmatprep.subr.msk.mxu1 %vm561_vm3, %v1685_v21  ;;  %v5436_v31 = vpop.f32.mrb[27].mxu0 }
 0x16c   : > { %v6306_v32 = vpop.f32.mrb[28].mxu0 }
 0x16d   : > { %v6308_v33 = vpop.f32.mrb[29].mxu0 }
 0x16f   : > { %5375 = vmatmul.mubr.msk.f32.vlgmr.msra.gmra.mrb[0].mxu1 %vm554_vm2, %v6256_v7 }
 0x170   : > { %5393 = vmatpush3.msk.msra.mxu1 %vm561_vm3, %v1685_v21  ;;  %5394 = vmatprep.mubr.msk.f32.mxu1 %vm554_vm2, %v6207_v54  ;;  %v2745_v34 = vpop.f32.mrb[30].mxu0 }
 0x171   : > { %5397 = vmatprep.subr.msk.mxu1 %vm561_vm3, %v1611_v18  ;;  %v5456_v35 = vpop.f32.mrb[31].mxu0 }
 0x173   : > { %5395 = vmatmul.mubr.msk.f32.vlgmr.msra.gmra.mrb[2].mxu1 %vm554_vm2, %v6235_v1 }
 0x174   : > { %5398 = vmatpush3.msk.msra.mxu1 %vm561_vm3, %v1611_v18  ;;  %5399 = vmatprep.mubr.msk.f32.mxu1 %vm554_vm2, %v6241_v3  ;;  %v2819_v36 = vpop.f32.mrb[32].mxu0 }
 0x175   : > { %5402 = vmatprep.subr.mxu1 %v6244_v4  ;;  %v5461_v37 = vpop.f32.mrb[33].mxu0 }
 0x178   : > { %v3152_v38 = vpop.f32.mrb[34].mxu0 }
 0x179   : > { %v5481_v39 = vpop.f32.mrb[35].mxu0 }
 0x17b   : > { %5400 = vmatmul.mubr.msk.f32.vlgmr.msra.gmra.mrb[2].mxu1 %vm554_vm2, %v6256_v7 }
 0x17c   : > { %5403 = vmatpush3.msra.mxu1 %v6244_v4  ;;  %5404 = vmatprep.mubr.msk.f32.mxu1 %vm311_vm0, %v1525_v16  ;;  %v3226_v40 = vpop.f32.mrb[36].mxu0 }
 0x17d   : > { %5417 = vmatprep.subr.msk.mxu1 %vm561_vm3, %v2092_v26  ;;  %v5486_v41 = vpop.f32.mrb[37].mxu0 }
 0x180   : > { %v3479_v42 = vpop.f32.mrb[38].mxu0 }
 0x181   : > { %v5501_v43 = vpop.f32.mrb[39].mxu0 }
 0x183   : > { %5405 = vmatmul.mubr.msk.f32.vlgmr.msra.gmra.mrb[2].mxu1 %vm311_vm0, %v5381_v15 }
 0x184   : > { %5418 = vmatpush3.msk.msra.mxu1 %vm561_vm3, %v2092_v26  ;;  %5419 = vmatprep.mubr.msk.f32.mxu1 %vm554_vm2, %v6266_v13  ;;  %v3552_v44 = vpop.f32.mrb[40].mxu0 }
 0x185   : > { %5422 = vmatprep.subr.msk.mxu1 %vm561_vm3, %v2018_v24  ;;  %v5506_v45 = vpop.f32.mrb[41].mxu0 }
 0x188   : > { %v6332_v46 = vpop.f32.mrb[42].mxu0 }
 0x189   : > { %v6334_v47 = vpop.f32.mrb[43].mxu0 }
 0x18b   : > { %5420 = vmatmul.mubr.msk.f32.vlgmr.msra.gmra.mrb[2].mxu1 %vm554_vm2, %v6276_v17 }
 0x18c   : > { %5423 = vmatpush3.msk.msra.mxu1 %vm561_vm3, %v2018_v24  ;;  %5424 = vmatprep.mubr.msk.f32.mxu1 %vm554_vm2, %v6281_v19  ;;  %v3879_v48 = vpop.f32.mrb[44].mxu0 }
 0x18d   : > { %5437 = vmatprep.subr.msk.mxu1 %vm561_vm3, %v2418_v30  ;;  %v5526_v49 = vpop.f32.mrb[45].mxu0 }
 0x190   : > { %v3953_v50 = vpop.f32.mrb[46].mxu0 }
 0x191   : > { %v5531_v51 = vpop.f32.mrb[47].mxu0 }
 0x193   : > { %5425 = vmatmul.mubr.msk.f32.vlgmr.msra.gmra.mrb[2].mxu1 %vm554_vm2, %v6292_v23 }
 0x194   : > { %5438 = vmatpush3.msk.msra.mxu1 %vm561_vm3, %v2418_v30  ;;  %5439 = vmatprep.mubr.msk.f32.mxu1 %vm554_vm2, %v6207_v54  ;;  %v4286_v52 = vpop.f32.mrb[48].mxu0 }
 0x195   : > { %5442 = vmatprep.subr.msk.mxu1 %vm561_vm3, %v2345_v28  ;;  %v5551_v53 = vpop.f32.mrb[49].mxu0 }
 0x198   : > { %v4360_v55 = vpop.f32.mrb[50].mxu0 }
 0x199   : > { %v5556_v56 = vpop.f32.mrb[51].mxu0 }
 0x19b   : > { %5440 = vmatmul.mubr.msk.f32.vlgmr.msra.gmra.mrb[2].mxu1 %vm554_vm2, %v6235_v1 }
 0x19c   : > { %5443 = vmatpush3.msk.msra.mxu1 %vm561_vm3, %v2345_v28  ;;  %5444 = vmatprep.mubr.msk.f32.mxu1 %vm554_vm2, %v6241_v3  ;;  %v4613_v57 = vpop.f32.mrb[52].mxu0 }
 0x19d   : > { %5462 = vmatprep.subr.msk.mxu1 %vm561_vm3, %v2819_v36  ;;  %v5571_v58 = vpop.f32.mrb[53].mxu0 }
 0x1a0   : > { %v4686_v59 = vpop.f32.mrb[54].mxu0 }
 0x1a1   : > { %v5576_v60 = vpop.f32.mrb[55].mxu0 }
 0x1a3   : > { %5445 = vmatmul.mubr.msk.f32.vlgmr.msra.gmra.mrb[2].mxu1 %vm554_vm2, %v6256_v7 }
 0x1a4   : > { %5463 = vmatpush3.msk.msra.mxu1 %vm561_vm3, %v2819_v36  ;;  %5464 = vmatprep.mubr.msk.f32.mxu1 %vm554_vm2, %v6207_v54 }
 0x1a5   : > { %5467 = vmatprep.subr.msk.mxu1 %vm561_vm3, %v2745_v34 }
 0x1a7   : > { %5465 = vmatmul.mubr.msk.f32.vlgmr.msra.gmra.mrb[4].mxu1 %vm554_vm2, %v6235_v1 }
 0x1a8   : > { %5468 = vmatpush3.msk.msra.mxu1 %vm561_vm3, %v2745_v34  ;;  %5469 = vmatprep.mubr.msk.f32.mxu1 %vm554_vm2, %v6241_v3 }
 0x1a9   : > { %5472 = vmatprep.subr.mxu1 %v6244_v4 }
 0x1af   : > { %5470 = vmatmul.mubr.msk.f32.vlgmr.msra.gmra.mrb[4].mxu1 %vm554_vm2, %v6256_v7 }
 0x1b0   : > { %5473 = vmatpush3.msra.mxu1 %v6244_v4  ;;  %5474 = vmatprep.mubr.msk.f32.mxu1 %vm311_vm0, %v6308_v33 }
 0x1b1   : > { %5487 = vmatprep.subr.msk.mxu1 %vm561_vm3, %v3226_v40 }
 0x1b7   : > { %5475 = vmatmul.mubr.msk.f32.vlgmr.msra.gmra.mrb[4].mxu1 %vm311_vm0, %v6306_v32 }
 0x1b8   : > { %5488 = vmatpush3.msk.msra.mxu1 %vm561_vm3, %v3226_v40  ;;  %5489 = vmatprep.mubr.msk.f32.mxu1 %vm554_vm2, %v6266_v13 }
 0x1b9   : > { %5492 = vmatprep.subr.msk.mxu1 %vm561_vm3, %v3152_v38 }
 0x1bf   : > { %5490 = vmatmul.mubr.msk.f32.vlgmr.msra.gmra.mrb[4].mxu1 %vm554_vm2, %v6276_v17 }
 0x1c0   : > { %5493 = vmatpush3.msk.msra.mxu1 %vm561_vm3, %v3152_v38  ;;  %5494 = vmatprep.mubr.msk.f32.mxu1 %vm554_vm2, %v6281_v19 }
 0x1c1   : > { %5507 = vmatprep.subr.msk.mxu1 %vm561_vm3, %v3552_v44 }
 0x1c7   : > { %5495 = vmatmul.mubr.msk.f32.vlgmr.msra.gmra.mrb[4].mxu1 %vm554_vm2, %v6292_v23 }
 0x1c8   : > { %5508 = vmatpush3.msk.msra.mxu1 %vm561_vm3, %v3552_v44  ;;  %5509 = vmatprep.mubr.msk.f32.mxu1 %vm554_vm2, %v6207_v54 }
 0x1c9   : > { %5512 = vmatprep.subr.msk.mxu1 %vm561_vm3, %v3479_v42 }
 0x1cf   : > { %5510 = vmatmul.mubr.msk.f32.vlgmr.msra.gmra.mrb[4].mxu1 %vm554_vm2, %v6235_v1 }
 0x1d0   : > { %5513 = vmatpush3.msk.msra.mxu1 %vm561_vm3, %v3479_v42  ;;  %5514 = vmatprep.mubr.msk.f32.mxu1 %vm554_vm2, %v6241_v3 }
 0x1d1   : > { %5532 = vmatprep.subr.msk.mxu1 %vm561_vm3, %v3953_v50 }
 0x1d7   : > { %5515 = vmatmul.mubr.msk.f32.vlgmr.msra.gmra.mrb[4].mxu1 %vm554_vm2, %v6256_v7 }
 0x1d8   : > { %5533 = vmatpush3.msk.msra.mxu1 %vm561_vm3, %v3953_v50  ;;  %5534 = vmatprep.mubr.msk.f32.mxu1 %vm554_vm2, %v6207_v54 }
 0x1d9   : > { %5537 = vmatprep.subr.msk.mxu1 %vm561_vm3, %v3879_v48 }
 0x1db   : > { %5535 = vmatmul.mubr.msk.f32.vlgmr.msra.gmra.mrb[6].mxu1 %vm554_vm2, %v6235_v1 }
 0x1dc   : > { %5538 = vmatpush3.msk.msra.mxu1 %vm561_vm3, %v3879_v48  ;;  %5539 = vmatprep.mubr.msk.f32.mxu1 %vm554_vm2, %v6241_v3 }
 0x1dd   : > { %5542 = vmatprep.subr.mxu1 %v6244_v4 }
 0x1e3   : > { %5540 = vmatmul.mubr.msk.f32.vlgmr.msra.gmra.mrb[6].mxu1 %vm554_vm2, %v6256_v7 }
 0x1e4   : > { %5543 = vmatpush3.msra.mxu1 %v6244_v4  ;;  %5544 = vmatprep.mubr.msk.f32.mxu1 %vm311_vm0, %v6334_v47 }
 0x1e5   : > { %5557 = vmatprep.subr.msk.mxu1 %vm561_vm3, %v4360_v55 }
 0x1eb   : > { %5545 = vmatmul.mubr.msk.f32.vlgmr.msra.gmra.mrb[6].mxu1 %vm311_vm0, %v6332_v46 }
 0x1ec   : > { %5558 = vmatpush3.msk.msra.mxu1 %vm561_vm3, %v4360_v55  ;;  %5559 = vmatprep.mubr.msk.f32.mxu1 %vm554_vm2, %v6266_v13 }
 0x1ed   : > { %5562 = vmatprep.subr.msk.mxu1 %vm561_vm3, %v4286_v52 }
 0x1f3   : > { %5560 = vmatmul.mubr.msk.f32.vlgmr.msra.gmra.mrb[6].mxu1 %vm554_vm2, %v6276_v17 }
 0x1f4   : > { %5563 = vmatpush3.msk.msra.mxu1 %vm561_vm3, %v4286_v52  ;;  %5564 = vmatprep.mubr.msk.f32.mxu1 %vm554_vm2, %v6281_v19 }
 0x1f5   : > { %5577 = vmatprep.subr.msk.mxu1 %vm561_vm3, %v4686_v59 }
 0x1fb   : > { %5565 = vmatmul.mubr.msk.f32.vlgmr.msra.gmra.mrb[6].mxu1 %vm554_vm2, %v6292_v23 }
 0x1fc   : > { %5578 = vmatpush3.msk.msra.mxu1 %vm561_vm3, %v4686_v59  ;;  %5579 = vmatprep.mubr.msk.f32.mxu1 %vm554_vm2, %v6207_v54 }
 0x1fd   : > { %5582 = vmatprep.subr.msk.mxu1 %vm561_vm3, %v4613_v57 }
 0x203   : > { %5580 = vmatmul.mubr.msk.f32.vlgmr.msra.gmra.mrb[6].mxu1 %vm554_vm2, %v6235_v1 }
 0x204   : > { %5583 = vmatpush3.msk.msra.mxu1 %vm561_vm3, %v4613_v57  ;;  %5584 = vmatprep.mubr.msk.f32.mxu1 %vm554_vm2, %v6241_v3 }
 0x20b   : > { %5585 = vmatmul.mubr.msk.f32.vlgmr.msra.gmra.mrb[6].mxu1 %vm554_vm2, %v6256_v7 }
 0x242   : > { %v5376_v61 = vpop.f32.mrb[0].mxu1 }
 0x243   : > { %1448 = vst.msk [vmem:[%s299_s12 + $0x8] sm:$0xff] %vm1446_vm4, %v5376_v61  ;;  %v1435_v54 = vpop.f32.mrb[1].mxu1 }
 0x244   : > { %1447 = vst.msk [vmem:[%s299_s12] sm:$0xff] %vm1446_vm4, %v1435_v54 }
 0x276   : > { %v5446_v62 = vpop.f32.mrb[2].mxu1 }
 0x277   : > { %5062 = vst.msk [vmem:[%s299_s12 + $0x18] sm:$0xff] %vm1446_vm4, %v5446_v62  ;;  %v2569_v63 = vpop.f32.mrb[3].mxu1 }
 0x278   : > { %5061 = vst.msk [vmem:[%s299_s12 + $0x10] sm:$0xff] %vm1446_vm4, %v2569_v63 }
 0x2aa   : > { %v5516_v0 = vpop.f32.mrb[4].mxu1 }
 0x2ab   : > { %5108 = vst.msk [vmem:[%s299_s12 + $0x28] sm:$0xff] %vm1446_vm4, %v5516_v0  ;;  %v3703_v1 = vpop.f32.mrb[5].mxu1 }
 0x2ac   : > { %5107 = vst.msk [vmem:[%s299_s12 + $0x20] sm:$0xff] %vm1446_vm4, %v3703_v1 }
 0x2de   : > { %v5586_v2 = vpop.f32.mrb[6].mxu1 }
 0x2df   : > { %5154 = vst.msk [vmem:[%s299_s12 + $0x38] sm:$0xff] %vm1446_vm4, %v5586_v2  ;;  %v4837_v3 = vpop.f32.mrb[7].mxu1 }
 0x2e0   : > { %5153 = vst.msk [vmem:[%s299_s12 + $0x30] sm:$0xff] %vm1446_vm4, %v4837_v3 }
 0x2e1   : > { %5772 = shalt.err (!%p5769_p7)
}
 0x2e2   : > { %s5773_s7 = scalar_lea.hbm %s6452_s20, 1024  ;;  %s5777_s15 = scalar_lea.hbm %s6504_s6, 2048 }
 0x2e3   : > { %p5774_p3 = scmp.ne.s32.totalorder %s6452_s20, %s5773_s7  ;;  %p5778_p8 = scmp.lt.u32.totalorder %s6452_s20, %s6504_s6 }
 0x2e4   : > { %p5779_p11 = scmp.lt.u32.totalorder %s5777_s15, %s5773_s7  ;;  %p5781_p10 = scmp.lt.u32.totalorder %s5773_s7, %s6452_s20 }
 0x2e5   : > { %p5775_p12 = pnand %p5774_p3, %p6523_p2 }
 0x2e6   : > { %p5780_p9 = por %p5779_p11, %p5778_p8 }
 0x2e7   : > { %p5776_p1 = pneg %p5775_p12 }
 0x2e8   : > { %p5782_p4 = por %p5781_p10, %p5780_p9 }
 0x2ea   : > { %p5783_p5 = pnand %p5782_p4, %p5776_p1 }
 0x2ec   : > { %5786 = shalt.err (!%p5783_p5)
}
 0x2ed   : > { %s5838_s18 = smov 128   ;;  %s5839_s17 = smov 8  }
 0x2ee   : > { %5644 = dma.vmem_to_hbm [thread:$0]  (%p6523_p2), %s6447_s8, 1024, %s6452_s20, %s4852_s26, %s5838_s18, %s5838_s18, %s5839_s17  }
 0x2ef PF: > { %s4881_s11 = sand.u32 1, %s5817_s21   ;;  %p6524_p0 = scmp.ne.s32.totalorder %s6513_s10, 0 }
 0x2f0   : > { %p6525_p6 = scmp.ge.s32.totalorder %s5829_s24, 2  ;;  %s4882_s25 = scalar_lea.sflag [#allocation4], %s4881_s11 }
 0x2f2   : > { %p5655_p13 = pnand %p6525_p6, %p6524_p0 }
 0x2f4   : > { %5812 = dma.done.wait (!%p5655_p13), %s4882_s25, 1024  }
 0x2f5   : > { %5814 = vsyncadd (!%p5655_p13), %s4882_s25, 4294966272  ;;  %p20_p7 = scmp.ge.s32.totalorder %s5900_s27, 4   ;;  %s6526_s21 = smov %s5821_s22 }
 0x2f6   : > { %s6527_s22 = smov %s5825_s23  ;;  %s6528_s23 = smov %s5912_s30 }
 0x2f7   : > { %s6529_s24 = smov %s5900_s27  ;;  %22 = sbr.rel (!%p20_p7) target bundleno = 6 (0x6), region = 132 }
 0x2fe   :  { %4887 = vsyncpa [#allocation3], 1 }
 0x2ff   :  { %4889 = vsyncpa [#allocation3 + $0x1], 1 }
 0x300   :  { %4890 = vsyncpa [#allocation6], 1 }
 0x301   :  { %4892 = vsyncpa [#allocation6 + $0x1], 1 }
 0x302   :  { %4893 = vsyncpa [#allocation4], 1 }
 0x303   :  { %4895 = vsyncpa [#allocation4 + $0x1], 1 }

</bundles_post_ra>
